<compile_context>
chip_gen: v7x
topology: tpu7x:2x2x1
jax: 0.10.0
libtpu: 0.0.40
codegen_flags: <defaults>
</compile_context>

<pallas_src>
import functools

import jax
import jax.numpy as jnp
import numpy as np
from jax.experimental import pallas as pl
from jax.experimental.pallas import tpu as pltpu


# ----------------------------------------------------------------------------
# Hyper-parameters (small, consistent with the module's __init__)
# ----------------------------------------------------------------------------
class HP:
    lang_num = 2
    st_token_num = 10
    at_token_num = 16          # vocab = 1 + 2 + 10 + 16 + 3 = 32
    hidden_dim = 32
    ffn_inner_dim = 64
    num_layers = 2
    num_heads = 4
    mt5_out_dim = 48
    mt5_vocab = 100
    max_len = 16               # audio token length
    max_text_len = 8
    text_free_g_ratio = 0.1
    st_free_g_ratio = 0.1
    rms_eps = 1e-6
    rope_theta = 10000.0

    @property
    def vocab_size(self):
        return 1 + self.lang_num + self.st_token_num + self.at_token_num + 3


VPAD = 128   # lane-aligned logits width; real vocab sliced outside the kernel


# ----------------------------------------------------------------------------
# Fused decoder kernel: one grid step per batch element, layers unrolled
# ----------------------------------------------------------------------------
def _decoder_kernel(
    t5_ref, wfc_ref, base_ref, bias_ref, cos_ref, sin_ref, rot_ref,
    ln1_ref, wq_ref, wk_ref, wv_ref, wo_ref,
    ln2_ref, wg_ref, wu_ref, wd_ref,
    fln_ref, lmh_ref,
    logits_ref,
    *, T, H, F, nH, Dh, L, eps,
):
    def mxu(a, b):
        # bf16 operands at the MXU boundary, f32 accumulate.
        return jnp.dot(a.astype(jnp.bfloat16), b.astype(jnp.bfloat16),
                       preferred_element_type=jnp.float32)

    def rmsnorm(x, w):
        var = jnp.mean(x * x, axis=-1, keepdims=True)
        return x * jax.lax.rsqrt(var + eps) * w

    # Residual stream for this batch element (stays in vregs/VMEM).
    # t5 input is pre-gated (padding + CFG) and zero-padded to T rows; the
    # gated prompt_fc bias is already folded into `base` host-side.
    h = base_ref[0] + mxu(t5_ref[0], wfc_ref[...])            # (T, H) f32

    # hoisted invariants (computed once, reused by both layers)
    cos = cos_ref[...]
    sin = sin_ref[...]
    rot = rot_ref[...]
    bias_st = jnp.concatenate([bias_ref[0]] * nH, axis=0)     # (nH*T, T) additive bias

    lane = jax.lax.broadcasted_iota(jnp.int32, (1, H), 1)
    head_masks = [
        jnp.where((lane >= hh * Dh) & (lane < (hh + 1) * Dh), 1.0, 0.0)
        for hh in range(nH)
    ]

    for l in range(L):                                        # static unroll, L=2
        # ---------------- self-attention block ----------------
        x = rmsnorm(h, ln1_ref[l])
        q = mxu(x, wq_ref[l])        # 1/sqrt(Dh) folded into Wq host-side
        k = mxu(x, wk_ref[l])
        v = mxu(x, wv_ref[l])

        # RoPE: rotate_half as a block-diagonal +-1 matmul (MXU, no lane shuffles)
        q = q * cos + mxu(q, rot) * sin
        k = k * cos + mxu(k, rot) * sin

        # Head-fused attention: stack per-head masked Q on the row axis, then
        # one score matmul, one softmax, one value matmul for all heads.
        q_st = jnp.concatenate([q * hm for hm in head_masks], axis=0)     # (nH*T, H)
        s = jax.lax.dot_general(
            q_st.astype(jnp.bfloat16), k.astype(jnp.bfloat16),
            (((1,), (1,)), ((), ())),
            preferred_element_type=jnp.float32) + bias_st                 # (nH*T, T)
        m = jnp.max(s, axis=-1, keepdims=True)
        p = jnp.exp(s - m)
        p = p * pl.reciprocal(jnp.sum(p, axis=-1, keepdims=True), approx=True)
        o_st = mxu(p, v)                                                  # (nH*T, H)
        attn = jnp.zeros((T, H), jnp.float32)
        for hh in range(nH):          # combine heads with masked adds
            attn = attn + o_st[hh * T:(hh + 1) * T, :] * head_masks[hh]
        h = h + mxu(attn, wo_ref[l])

        # ---------------- SwiGLU MLP block ----------------
        xm = rmsnorm(h, ln2_ref[l])
        g = mxu(xm, wg_ref[l])
        u = mxu(xm, wu_ref[l])
        h = h + mxu(g * jax.nn.sigmoid(g) * u, wd_ref[l])

    # ---- final norm + lm_head (lane-padded to 128 -> unmasked stores) ----
    xf = rmsnorm(h, fln_ref[...])
    logits_ref[0] = mxu(xf, lmh_ref[...])


# ----------------------------------------------------------------------------
# Parameters & host-side helpers
# ----------------------------------------------------------------------------
def init_params(key, hp: HP):
    H, F, V, L = hp.hidden_dim, hp.ffn_inner_dim, hp.vocab_size, hp.num_layers
    keys = iter(jax.random.split(key, 32))
    nrm = lambda shape: 0.02 * jax.random.normal(next(keys), shape, jnp.float32)

    p = {}
    # TODO(synk): MT5EncoderModel.from_pretrained (+ LoRA) is an external
    # checkpoint; replaced by a deterministic embedding table acting as the
    # encoder's last_hidden_state.
    p["mt5_embed"] = nrm((hp.mt5_vocab, hp.mt5_out_dim))
    p["prompt_fc_w"] = nrm((hp.mt5_out_dim, H))
    p["prompt_fc_b"] = jnp.zeros((H,), jnp.float32)

    emb = 0.02 * jax.random.truncated_normal(next(keys), -2.0, 2.0, (V, H), jnp.float32)
    p["embed_tokens"] = emb.at[0].set(0.0)   # padding_idx=0 & constant_(w[0], 0)
    p["embed_segments"] = nrm((3, H))

    # per-layer weights stacked on a leading layer axis (resident, full blocks)
    p["ln1_w"] = jnp.ones((L, 1, H), jnp.float32)
    p["wq"] = nrm((L, H, H))
    p["wk"] = nrm((L, H, H))
    p["wv"] = nrm((L, H, H))
    p["wo"] = nrm((L, H, H))
    p["ln2_w"] = jnp.ones((L, 1, H), jnp.float32)
    p["wgate"] = nrm((L, H, F))
    p["wup"] = nrm((L, H, F))
    p["wdown"] = nrm((L, F, H))
    p["final_ln_w"] = jnp.ones((1, H), jnp.float32)
    p["lm_head_w"] = nrm((H, V))
    return p


def _rot_matrix(H, nH, Dh):
    # out = x @ R  ==  rotate_half(x) applied per head (HF convention).
    R = np.zeros((H, H), np.float32)
    for hh in range(nH):
        base = hh * Dh
        for j in range(Dh // 2):
            R[base + j + Dh // 2, base + j] = -1.0
            R[base + j, base + j + Dh // 2] = 1.0
    return jnp.asarray(R)


# ----------------------------------------------------------------------------
# Forward
# ----------------------------------------------------------------------------
def vox_instruct_ar_forward(params, hp: HP, input_ids, segment_ids, attention_mask,
                            text_ids, text_attn_mask, rng):
    B, Ta = input_ids.shape
    Tt = text_ids.shape[1]
    T = Tt + Ta
    H, F, L, nH = hp.hidden_dim, hp.ffn_inner_dim, hp.num_layers, hp.num_heads
    Dh = H // nH
    V = hp.vocab_size
    scale = 1.0 / (Dh ** 0.5)

    # --- "MT5 encoder" output (synthetic, deterministic) ---
    t5h = jnp.take(params["mt5_embed"], text_ids, axis=0)            # (B, Tt, mt5)

    # --- CFG dropout flags ---
    k1, k2 = jax.random.split(rng)
    text_free = jax.random.uniform(k1, (B,)) < hp.text_free_g_ratio
    st_free = jax.random.uniform(k2, (B,)) < hp.st_free_g_ratio

    # padding mask + text CFG dropout folded into a 0/1 gate applied HOST-side:
    # (x*g) @ W + b*g  ==  (x @ W + b) * g
    tkeep = ((text_attn_mask > 0) & (~text_free)[:, None]).astype(jnp.float32)  # (B,Tt)
    t5_gated = t5h * tkeep[..., None]
    t5_pad = jnp.concatenate(
        [t5_gated, jnp.zeros((B, Ta, hp.mt5_out_dim), jnp.float32)], axis=1)    # (B,T,mt5)

    # semantic-token (segment==1) CFG dropout
    input_ids = jnp.where((segment_ids == 1) & st_free[:, None], 0, input_ids)

    # token + segment embeddings (data-dependent gathers stay in XLA);
    # gated prompt_fc bias is folded into the text rows of `base`.
    tok_emb = jnp.take(params["embed_tokens"], input_ids, axis=0)               # (B,Ta,H)
    ext_seg = jnp.concatenate([jnp.zeros_like(text_ids), segment_ids], axis=1)
    seg_emb = jnp.take(params["embed_segments"], ext_seg, axis=0)               # (B,T,H)
    fc_bias_rows = tkeep[..., None] * params["prompt_fc_b"][None, None, :]      # (B,Tt,H)
    base = jnp.concatenate([fc_bias_rows, tok_emb], axis=1) + seg_emb           # (B,T,H)

    # causal + key-padding additive bias, precomputed once (B,T,T)
    ext_mask = jnp.concatenate([jnp.ones_like(text_attn_mask), attention_mask], axis=1)
    row = jnp.arange(T)[:, None]
    col = jnp.arange(T)[None, :]
    causal = row >= col
    bias = jnp.where(causal[None, :, :] & (ext_mask[:, None, :] > 0),
                     0.0, -1e9).astype(jnp.float32)

    # RoPE tables (T, H): same Dh pattern tiled across heads
    pos = jnp.arange(T, dtype=jnp.float32)
    inv_freq = 1.0 / (hp.rope_theta ** (jnp.arange(0, Dh, 2, dtype=jnp.float32) / Dh))
    freqs = pos[:, None] * inv_freq[None, :]
    emb = jnp.concatenate([freqs, freqs], axis=-1)                              # (T, Dh)
    cos = jnp.tile(jnp.cos(emb), (1, nH))
    sin = jnp.tile(jnp.sin(emb), (1, nH))

    bf = lambda a: a.astype(jnp.bfloat16)
    wq = bf(params["wq"] * scale)          # fold 1/sqrt(Dh) into Wq
    wk = bf(params["wk"])
    wv = bf(params["wv"])
    wo = bf(params["wo"])
    wg = bf(params["wgate"])
    wu = bf(params["wup"])
    wd = bf(params["wdown"])
    wfc = bf(params["prompt_fc_w"])
    rot = bf(_rot_matrix(H, nH, Dh))
    lmh = bf(jnp.zeros((H, VPAD), jnp.float32).at[:, :V].set(params["lm_head_w"]))

    kern = functools.partial(_decoder_kernel, T=T, H=H, F=F, nH=nH, Dh=Dh, L=L,
                             eps=hp.rms_eps)

    full = lambda shape: pl.BlockSpec(shape, lambda b: (0,) * len(shape))
    perb = lambda shape: pl.BlockSpec((1,) + shape, lambda b: (b,) + (0,) * len(shape))

    logits_pad = pl.pallas_call(
        kern,
        out_shape=jax.ShapeDtypeStruct((B, T, VPAD), jnp.float32),
        grid=(B,),
        in_specs=[
            perb((T, hp.mt5_out_dim)),       # pre-gated, T-padded t5 hidden states
            full((hp.mt5_out_dim, H)),       # prompt_fc W
            perb((T, H)),                    # base embeds (+ gated fc bias)
            perb((T, T)),                    # causal + padding bias
            full((T, H)),                    # rope cos
            full((T, H)),                    # rope sin
            full((H, H)),                    # rotate_half matrix
            full((L, 1, H)),                 # ln1 (stacked over layers)
            full((L, H, H)),                 # Wq (scaled)
            full((L, H, H)),                 # Wk
            full((L, H, H)),                 # Wv
            full((L, H, H)),                 # Wo
            full((L, 1, H)),                 # ln2
            full((L, H, F)),                 # Wgate
            full((L, H, F)),                 # Wup
            full((L, F, H)),                 # Wdown
            full((1, H)),                    # final norm
            full((H, VPAD)),                 # lm_head padded to 128 lanes
        ],
        out_specs=perb((T, VPAD)),
        compiler_params=pltpu.CompilerParams(
            dimension_semantics=("parallel",)),   # batch axis -> 2nd TC on v7x
    )(t5_pad, wfc, base, bias, cos, sin, rot,
      params["ln1_w"], wq, wk, wv, wo,
      params["ln2_w"], wg, wu, wd,
      params["final_ln_w"], lmh)

    return logits_pad[:, :, :V]


# ----------------------------------------------------------------------------
# Main
# ----------------------------------------------------------------------------
if __name__ == "__main__":
    hp = HP()
    B, Ta, Tt = 2, hp.max_len, hp.max_text_len
    V = hp.vocab_size

    root = jax.random.PRNGKey(0)
    kp, kd, kr = jax.random.split(root, 3)
    params = init_params(kp, hp)

    k1, k2, k3 = jax.random.split(kd, 3)
    input_ids = jax.random.randint(k1, (B, Ta), 1, V)
    segment_ids = jax.random.randint(k2, (B, Ta), 1, 3)
    attention_mask = jnp.concatenate(
        [jnp.ones((B, Ta - 2), jnp.int32), jnp.zeros((B, 2), jnp.int32)], axis=1)
    text_ids = jax.random.randint(k3, (B, Tt), 1, hp.mt5_vocab)
    text_attn_mask = jnp.concatenate(
        [jnp.ones((B, Tt - 2), jnp.int32), jnp.zeros((B, 2), jnp.int32)], axis=1)

    fwd = jax.jit(functools.partial(vox_instruct_ar_forward, params, hp))
    logits = fwd(input_ids, segment_ids, attention_mask, text_ids, text_attn_mask, kr)
    jax.block_until_ready(logits)

    assert logits.shape == (B, Tt + Ta, V), logits.shape
    assert bool(jnp.all(jnp.isfinite(logits)))
    print("KERNEL_OK")
</pallas_src>

<mosaic_0001>
module attributes {stable_mosaic.version = 11 : i64} {
  func.func @_decoder_kernel(%arg0: i32, %arg1: memref<1x24x48xf32, #tpu.memory_space<vmem>>, %arg2: memref<48x32xbf16, #tpu.memory_space<vmem>>, %arg3: memref<1x24x32xf32, #tpu.memory_space<vmem>>, %arg4: memref<1x24x24xf32, #tpu.memory_space<vmem>>, %arg5: memref<24x32xf32, #tpu.memory_space<vmem>>, %arg6: memref<24x32xf32, #tpu.memory_space<vmem>>, %arg7: memref<32x32xbf16, #tpu.memory_space<vmem>>, %arg8: memref<2x1x32xf32, #tpu.memory_space<vmem>>, %arg9: memref<2x32x32xbf16, #tpu.memory_space<vmem>>, %arg10: memref<2x32x32xbf16, #tpu.memory_space<vmem>>, %arg11: memref<2x32x32xbf16, #tpu.memory_space<vmem>>, %arg12: memref<2x32x32xbf16, #tpu.memory_space<vmem>>, %arg13: memref<2x1x32xf32, #tpu.memory_space<vmem>>, %arg14: memref<2x32x64xbf16, #tpu.memory_space<vmem>>, %arg15: memref<2x32x64xbf16, #tpu.memory_space<vmem>>, %arg16: memref<2x64x32xbf16, #tpu.memory_space<vmem>>, %arg17: memref<1x32xf32, #tpu.memory_space<vmem>>, %arg18: memref<32x128xbf16, #tpu.memory_space<vmem>>, %arg19: memref<1x24x128xf32, #tpu.memory_space<vmem>>) attributes {dimension_semantics = [#tpu.dimension_semantics<parallel>], iteration_bounds = array<i64: 2>, scalar_prefetch = 0 : i64, scratch_operands = 0 : i64, tpu.core_type = #tpu.core_type<tc>, window_params = [{transform_indices = @transform_0, window_bounds = array<i64: 1, 24, 48>}, {pipeline_mode = #tpu.pipeline_mode<synchronous>, transform_indices = @transform_1, window_bounds = array<i64: 48, 32>}, {transform_indices = @transform_2, window_bounds = array<i64: 1, 24, 32>}, {transform_indices = @transform_3, window_bounds = array<i64: 1, 24, 24>}, {pipeline_mode = #tpu.pipeline_mode<synchronous>, transform_indices = @transform_4, window_bounds = array<i64: 24, 32>}, {pipeline_mode = #tpu.pipeline_mode<synchronous>, transform_indices = @transform_5, window_bounds = array<i64: 24, 32>}, {pipeline_mode = #tpu.pipeline_mode<synchronous>, transform_indices = @transform_6, window_bounds = array<i64: 32, 32>}, {pipeline_mode = #tpu.pipeline_mode<synchronous>, transform_indices = @transform_7, window_bounds = array<i64: 2, 1, 32>}, {pipeline_mode = #tpu.pipeline_mode<synchronous>, transform_indices = @transform_8, window_bounds = array<i64: 2, 32, 32>}, {pipeline_mode = #tpu.pipeline_mode<synchronous>, transform_indices = @transform_9, window_bounds = array<i64: 2, 32, 32>}, {pipeline_mode = #tpu.pipeline_mode<synchronous>, transform_indices = @transform_10, window_bounds = array<i64: 2, 32, 32>}, {pipeline_mode = #tpu.pipeline_mode<synchronous>, transform_indices = @transform_11, window_bounds = array<i64: 2, 32, 32>}, {pipeline_mode = #tpu.pipeline_mode<synchronous>, transform_indices = @transform_12, window_bounds = array<i64: 2, 1, 32>}, {pipeline_mode = #tpu.pipeline_mode<synchronous>, transform_indices = @transform_13, window_bounds = array<i64: 2, 32, 64>}, {pipeline_mode = #tpu.pipeline_mode<synchronous>, transform_indices = @transform_14, window_bounds = array<i64: 2, 32, 64>}, {pipeline_mode = #tpu.pipeline_mode<synchronous>, transform_indices = @transform_15, window_bounds = array<i64: 2, 64, 32>}, {pipeline_mode = #tpu.pipeline_mode<synchronous>, transform_indices = @transform_16, window_bounds = array<i64: 1, 32>}, {pipeline_mode = #tpu.pipeline_mode<synchronous>, transform_indices = @transform_17, window_bounds = array<i64: 32, 128>}, {transform_indices = @transform_18, window_bounds = array<i64: 1, 24, 128>}]} {
    %c0 = arith.constant 0 : index
    %c0_0 = arith.constant 0 : index
    %c0_1 = arith.constant 0 : index
    %0 = vector.load %arg3[%c0, %c0_0, %c0_1] : memref<1x24x32xf32, #tpu.memory_space<vmem>>, vector<1x24x32xf32>
    %1 = vector.shape_cast %0 : vector<1x24x32xf32> to vector<24x32xf32>
    %c0_2 = arith.constant 0 : index
    %c0_3 = arith.constant 0 : index
    %c0_4 = arith.constant 0 : index
    %2 = vector.load %arg1[%c0_2, %c0_3, %c0_4] : memref<1x24x48xf32, #tpu.memory_space<vmem>>, vector<1x24x48xf32>
    %3 = vector.shape_cast %2 : vector<1x24x48xf32> to vector<24x48xf32>
    %c0_5 = arith.constant 0 : index
    %c0_6 = arith.constant 0 : index
    %4 = vector.load %arg2[%c0_5, %c0_6] : memref<48x32xbf16, #tpu.memory_space<vmem>>, vector<48x32xbf16>
    %5 = arith.truncf %3 : vector<24x48xf32> to vector<24x48xbf16>
    %cst = arith.constant dense<0.000000e+00> : vector<24x32xf32>
    %6 = tpu.matmul %5, %4, %cst {dimension_numbers = #tpu.dot_dimension_numbers<[1], [0], [0], [1], [0, 0, 1, 1], [], []>} : vector<24x48xbf16>, vector<48x32xbf16>, vector<24x32xf32> -> vector<24x32xf32>
    %7 = arith.addf %1, %6 : vector<24x32xf32>
    %c0_7 = arith.constant 0 : index
    %c0_8 = arith.constant 0 : index
    %8 = vector.load %arg5[%c0_7, %c0_8] : memref<24x32xf32, #tpu.memory_space<vmem>>, vector<24x32xf32>
    %c0_9 = arith.constant 0 : index
    %c0_10 = arith.constant 0 : index
    %9 = vector.load %arg6[%c0_9, %c0_10] : memref<24x32xf32, #tpu.memory_space<vmem>>, vector<24x32xf32>
    %c0_11 = arith.constant 0 : index
    %c0_12 = arith.constant 0 : index
    %10 = vector.load %arg7[%c0_11, %c0_12] : memref<32x32xbf16, #tpu.memory_space<vmem>>, vector<32x32xbf16>
    %c0_13 = arith.constant 0 : index
    %c0_14 = arith.constant 0 : index
    %c0_15 = arith.constant 0 : index
    %11 = vector.load %arg4[%c0_13, %c0_14, %c0_15] : memref<1x24x24xf32, #tpu.memory_space<vmem>>, vector<1x24x24xf32>
    %12 = vector.shape_cast %11 : vector<1x24x24xf32> to vector<24x24xf32>
    %13 = tpu.concatenate %12, %12, %12, %12 in 0 : vector<24x24xf32>, vector<24x24xf32>, vector<24x24xf32>, vector<24x24xf32> -> vector<96x24xf32>
    %14 = tpu.iota {dimensions = array<i32: 1>} : vector<1x32xi32>
    %c0_i32 = arith.constant 0 : i32
    %15 = vector.broadcast %c0_i32 : i32 to vector<1x32xi32>
    %16 = arith.cmpi sge, %14, %15 : vector<1x32xi32>
    %c8_i32 = arith.constant 8 : i32
    %17 = vector.broadcast %c8_i32 : i32 to vector<1x32xi32>
    %18 = arith.cmpi slt, %14, %17 : vector<1x32xi32>
    %19 = arith.andi %16, %18 : vector<1x32xi1>
    %cst_16 = arith.constant 1.000000e+00 : f32
    %cst_17 = arith.constant 0.000000e+00 : f32
    %20 = vector.broadcast %cst_16 : f32 to vector<1x32xf32>
    %21 = vector.broadcast %cst_17 : f32 to vector<1x32xf32>
    %22 = arith.select %19, %20, %21 : vector<1x32xi1>, vector<1x32xf32>
    %c8_i32_18 = arith.constant 8 : i32
    %23 = vector.broadcast %c8_i32_18 : i32 to vector<1x32xi32>
    %24 = arith.cmpi sge, %14, %23 : vector<1x32xi32>
    %c16_i32 = arith.constant 16 : i32
    %25 = vector.broadcast %c16_i32 : i32 to vector<1x32xi32>
    %26 = arith.cmpi slt, %14, %25 : vector<1x32xi32>
    %27 = arith.andi %24, %26 : vector<1x32xi1>
    %cst_19 = arith.constant 1.000000e+00 : f32
    %cst_20 = arith.constant 0.000000e+00 : f32
    %28 = vector.broadcast %cst_19 : f32 to vector<1x32xf32>
    %29 = vector.broadcast %cst_20 : f32 to vector<1x32xf32>
    %30 = arith.select %27, %28, %29 : vector<1x32xi1>, vector<1x32xf32>
    %c16_i32_21 = arith.constant 16 : i32
    %31 = vector.broadcast %c16_i32_21 : i32 to vector<1x32xi32>
    %32 = arith.cmpi sge, %14, %31 : vector<1x32xi32>
    %c24_i32 = arith.constant 24 : i32
    %33 = vector.broadcast %c24_i32 : i32 to vector<1x32xi32>
    %34 = arith.cmpi slt, %14, %33 : vector<1x32xi32>
    %35 = arith.andi %32, %34 : vector<1x32xi1>
    %cst_22 = arith.constant 1.000000e+00 : f32
    %cst_23 = arith.constant 0.000000e+00 : f32
    %36 = vector.broadcast %cst_22 : f32 to vector<1x32xf32>
    %37 = vector.broadcast %cst_23 : f32 to vector<1x32xf32>
    %38 = arith.select %35, %36, %37 : vector<1x32xi1>, vector<1x32xf32>
    %c24_i32_24 = arith.constant 24 : i32
    %39 = vector.broadcast %c24_i32_24 : i32 to vector<1x32xi32>
    %40 = arith.cmpi sge, %14, %39 : vector<1x32xi32>
    %c32_i32 = arith.constant 32 : i32
    %41 = vector.broadcast %c32_i32 : i32 to vector<1x32xi32>
    %42 = arith.cmpi slt, %14, %41 : vector<1x32xi32>
    %43 = arith.andi %40, %42 : vector<1x32xi1>
    %cst_25 = arith.constant 1.000000e+00 : f32
    %cst_26 = arith.constant 0.000000e+00 : f32
    %44 = vector.broadcast %cst_25 : f32 to vector<1x32xf32>
    %45 = vector.broadcast %cst_26 : f32 to vector<1x32xf32>
    %46 = arith.select %43, %44, %45 : vector<1x32xi1>, vector<1x32xf32>
    %c0_27 = arith.constant 0 : index
    %c0_28 = arith.constant 0 : index
    %c0_29 = arith.constant 0 : index
    %47 = vector.load %arg8[%c0_27, %c0_28, %c0_29] : memref<2x1x32xf32, #tpu.memory_space<vmem>>, vector<1x1x32xf32>
    %48 = vector.shape_cast %47 : vector<1x1x32xf32> to vector<1x32xf32>
    %49 = arith.mulf %7, %7 : vector<24x32xf32>
    %cst_30 = arith.constant dense<0.000000e+00> : vector<24xf32>
    %50 = vector.multi_reduction <add>, %49, %cst_30 [1] : vector<24x32xf32> to vector<24xf32>
    %51 = vector.shape_cast %50 : vector<24xf32> to vector<24x1xf32>
    %cst_31 = arith.constant 3.200000e+01 : f32
    %52 = vector.broadcast %cst_31 : f32 to vector<24x1xf32>
    %53 = arith.divf %51, %52 : vector<24x1xf32>
    %cst_32 = arith.constant 9.99999997E-7 : f32
    %54 = vector.broadcast %cst_32 : f32 to vector<24x1xf32>
    %55 = arith.addf %53, %54 : vector<24x1xf32>
    %56 = math.rsqrt %55 : vector<24x1xf32>
    %57 = vector.broadcast %56 : vector<24x1xf32> to vector<24x32xf32>
    %58 = arith.mulf %7, %57 : vector<24x32xf32>
    %59 = vector.broadcast %48 : vector<1x32xf32> to vector<24x32xf32>
    %60 = arith.mulf %58, %59 : vector<24x32xf32>
    %c0_33 = arith.constant 0 : index
    %c0_34 = arith.constant 0 : index
    %c0_35 = arith.constant 0 : index
    %61 = vector.load %arg9[%c0_33, %c0_34, %c0_35] : memref<2x32x32xbf16, #tpu.memory_space<vmem>>, vector<1x32x32xbf16>
    %62 = vector.shape_cast %61 : vector<1x32x32xbf16> to vector<32x32xbf16>
    %63 = arith.truncf %60 : vector<24x32xf32> to vector<24x32xbf16>
    %cst_36 = arith.constant dense<0.000000e+00> : vector<24x32xf32>
    %64 = tpu.matmul %63, %62, %cst_36 {dimension_numbers = #tpu.dot_dimension_numbers<[1], [0], [0], [1], [0, 0, 1, 1], [], []>} : vector<24x32xbf16>, vector<32x32xbf16>, vector<24x32xf32> -> vector<24x32xf32>
    %c0_37 = arith.constant 0 : index
    %c0_38 = arith.constant 0 : index
    %c0_39 = arith.constant 0 : index
    %65 = vector.load %arg10[%c0_37, %c0_38, %c0_39] : memref<2x32x32xbf16, #tpu.memory_space<vmem>>, vector<1x32x32xbf16>
    %66 = vector.shape_cast %65 : vector<1x32x32xbf16> to vector<32x32xbf16>
    %67 = arith.truncf %60 : vector<24x32xf32> to vector<24x32xbf16>
    %cst_40 = arith.constant dense<0.000000e+00> : vector<24x32xf32>
    %68 = tpu.matmul %67, %66, %cst_40 {dimension_numbers = #tpu.dot_dimension_numbers<[1], [0], [0], [1], [0, 0, 1, 1], [], []>} : vector<24x32xbf16>, vector<32x32xbf16>, vector<24x32xf32> -> vector<24x32xf32>
    %c0_41 = arith.constant 0 : index
    %c0_42 = arith.constant 0 : index
    %c0_43 = arith.constant 0 : index
    %69 = vector.load %arg11[%c0_41, %c0_42, %c0_43] : memref<2x32x32xbf16, #tpu.memory_space<vmem>>, vector<1x32x32xbf16>
    %70 = vector.shape_cast %69 : vector<1x32x32xbf16> to vector<32x32xbf16>
    %71 = arith.truncf %60 : vector<24x32xf32> to vector<24x32xbf16>
    %cst_44 = arith.constant dense<0.000000e+00> : vector<24x32xf32>
    %72 = tpu.matmul %71, %70, %cst_44 {dimension_numbers = #tpu.dot_dimension_numbers<[1], [0], [0], [1], [0, 0, 1, 1], [], []>} : vector<24x32xbf16>, vector<32x32xbf16>, vector<24x32xf32> -> vector<24x32xf32>
    %73 = arith.mulf %64, %8 : vector<24x32xf32>
    %74 = arith.truncf %64 : vector<24x32xf32> to vector<24x32xbf16>
    %cst_45 = arith.constant dense<0.000000e+00> : vector<24x32xf32>
    %75 = tpu.matmul %74, %10, %cst_45 {dimension_numbers = #tpu.dot_dimension_numbers<[1], [0], [0], [1], [0, 0, 1, 1], [], []>} : vector<24x32xbf16>, vector<32x32xbf16>, vector<24x32xf32> -> vector<24x32xf32>
    %76 = arith.mulf %75, %9 : vector<24x32xf32>
    %77 = arith.addf %73, %76 : vector<24x32xf32>
    %78 = arith.mulf %68, %8 : vector<24x32xf32>
    %79 = arith.truncf %68 : vector<24x32xf32> to vector<24x32xbf16>
    %cst_46 = arith.constant dense<0.000000e+00> : vector<24x32xf32>
    %80 = tpu.matmul %79, %10, %cst_46 {dimension_numbers = #tpu.dot_dimension_numbers<[1], [0], [0], [1], [0, 0, 1, 1], [], []>} : vector<24x32xbf16>, vector<32x32xbf16>, vector<24x32xf32> -> vector<24x32xf32>
    %81 = arith.mulf %80, %9 : vector<24x32xf32>
    %82 = arith.addf %78, %81 : vector<24x32xf32>
    %83 = vector.broadcast %22 : vector<1x32xf32> to vector<24x32xf32>
    %84 = arith.mulf %77, %83 : vector<24x32xf32>
    %85 = vector.broadcast %30 : vector<1x32xf32> to vector<24x32xf32>
    %86 = arith.mulf %77, %85 : vector<24x32xf32>
    %87 = vector.broadcast %38 : vector<1x32xf32> to vector<24x32xf32>
    %88 = arith.mulf %77, %87 : vector<24x32xf32>
    %89 = vector.broadcast %46 : vector<1x32xf32> to vector<24x32xf32>
    %90 = arith.mulf %77, %89 : vector<24x32xf32>
    %91 = tpu.concatenate %84, %86, %88, %90 in 0 : vector<24x32xf32>, vector<24x32xf32>, vector<24x32xf32>, vector<24x32xf32> -> vector<96x32xf32>
    %92 = arith.truncf %91 : vector<96x32xf32> to vector<96x32xbf16>
    %93 = arith.truncf %82 : vector<24x32xf32> to vector<24x32xbf16>
    %cst_47 = arith.constant dense<0.000000e+00> : vector<96x24xf32>
    %94 = tpu.matmul %92, %93, %cst_47 {dimension_numbers = #tpu.dot_dimension_numbers<[1], [1], [0], [0], [0, 0, 1, 0], [], []>} : vector<96x32xbf16>, vector<24x32xbf16>, vector<96x24xf32> -> vector<96x24xf32>
    %95 = arith.addf %94, %13 : vector<96x24xf32>
    %cst_48 = arith.constant dense<0xFF800000> : vector<96xf32>
    %96 = vector.multi_reduction <maximumf>, %95, %cst_48 [1] : vector<96x24xf32> to vector<96xf32>
    %97 = vector.shape_cast %96 : vector<96xf32> to vector<96x1xf32>
    %98 = vector.broadcast %97 : vector<96x1xf32> to vector<96x24xf32>
    %99 = arith.subf %95, %98 : vector<96x24xf32>
    %100 = math.exp %99 : vector<96x24xf32>
    %cst_49 = arith.constant dense<0.000000e+00> : vector<96xf32>
    %101 = vector.multi_reduction <add>, %100, %cst_49 [1] : vector<96x24xf32> to vector<96xf32>
    %102 = vector.shape_cast %101 : vector<96xf32> to vector<96x1xf32>
    %103 = tpu.reciprocal %102 {approx = true} : vector<96x1xf32> -> vector<96x1xf32>
    %104 = vector.broadcast %103 : vector<96x1xf32> to vector<96x24xf32>
    %105 = arith.mulf %100, %104 : vector<96x24xf32>
    %106 = arith.truncf %105 : vector<96x24xf32> to vector<96x24xbf16>
    %107 = arith.truncf %72 : vector<24x32xf32> to vector<24x32xbf16>
    %cst_50 = arith.constant dense<0.000000e+00> : vector<96x32xf32>
    %108 = tpu.matmul %106, %107, %cst_50 {dimension_numbers = #tpu.dot_dimension_numbers<[1], [0], [0], [1], [0, 0, 1, 1], [], []>} : vector<96x24xbf16>, vector<24x32xbf16>, vector<96x32xf32> -> vector<96x32xf32>
    %cst_51 = arith.constant 0.000000e+00 : f32
    %109 = vector.broadcast %cst_51 : f32 to vector<24x32xf32>
    %110 = vector.extract_strided_slice %108 {offsets = [0, 0], sizes = [24, 32], strides = [1, 1]} : vector<96x32xf32> to vector<24x32xf32>
    %111 = vector.broadcast %22 : vector<1x32xf32> to vector<24x32xf32>
    %112 = arith.mulf %110, %111 : vector<24x32xf32>
    %113 = arith.addf %109, %112 : vector<24x32xf32>
    %114 = vector.extract_strided_slice %108 {offsets = [24, 0], sizes = [24, 32], strides = [1, 1]} : vector<96x32xf32> to vector<24x32xf32>
    %115 = vector.broadcast %30 : vector<1x32xf32> to vector<24x32xf32>
    %116 = arith.mulf %114, %115 : vector<24x32xf32>
    %117 = arith.addf %113, %116 : vector<24x32xf32>
    %118 = vector.extract_strided_slice %108 {offsets = [48, 0], sizes = [24, 32], strides = [1, 1]} : vector<96x32xf32> to vector<24x32xf32>
    %119 = vector.broadcast %38 : vector<1x32xf32> to vector<24x32xf32>
    %120 = arith.mulf %118, %119 : vector<24x32xf32>
    %121 = arith.addf %117, %120 : vector<24x32xf32>
    %122 = vector.extract_strided_slice %108 {offsets = [72, 0], sizes = [24, 32], strides = [1, 1]} : vector<96x32xf32> to vector<24x32xf32>
    %123 = vector.broadcast %46 : vector<1x32xf32> to vector<24x32xf32>
    %124 = arith.mulf %122, %123 : vector<24x32xf32>
    %125 = arith.addf %121, %124 : vector<24x32xf32>
    %c0_52 = arith.constant 0 : index
    %c0_53 = arith.constant 0 : index
    %c0_54 = arith.constant 0 : index
    %126 = vector.load %arg12[%c0_52, %c0_53, %c0_54] : memref<2x32x32xbf16, #tpu.memory_space<vmem>>, vector<1x32x32xbf16>
    %127 = vector.shape_cast %126 : vector<1x32x32xbf16> to vector<32x32xbf16>
    %128 = arith.truncf %125 : vector<24x32xf32> to vector<24x32xbf16>
    %cst_55 = arith.constant dense<0.000000e+00> : vector<24x32xf32>
    %129 = tpu.matmul %128, %127, %cst_55 {dimension_numbers = #tpu.dot_dimension_numbers<[1], [0], [0], [1], [0, 0, 1, 1], [], []>} : vector<24x32xbf16>, vector<32x32xbf16>, vector<24x32xf32> -> vector<24x32xf32>
    %130 = arith.addf %7, %129 : vector<24x32xf32>
    %c0_56 = arith.constant 0 : index
    %c0_57 = arith.constant 0 : index
    %c0_58 = arith.constant 0 : index
    %131 = vector.load %arg13[%c0_56, %c0_57, %c0_58] : memref<2x1x32xf32, #tpu.memory_space<vmem>>, vector<1x1x32xf32>
    %132 = vector.shape_cast %131 : vector<1x1x32xf32> to vector<1x32xf32>
    %133 = arith.mulf %130, %130 : vector<24x32xf32>
    %cst_59 = arith.constant dense<0.000000e+00> : vector<24xf32>
    %134 = vector.multi_reduction <add>, %133, %cst_59 [1] : vector<24x32xf32> to vector<24xf32>
    %135 = vector.shape_cast %134 : vector<24xf32> to vector<24x1xf32>
    %cst_60 = arith.constant 3.200000e+01 : f32
    %136 = vector.broadcast %cst_60 : f32 to vector<24x1xf32>
    %137 = arith.divf %135, %136 : vector<24x1xf32>
    %cst_61 = arith.constant 9.99999997E-7 : f32
    %138 = vector.broadcast %cst_61 : f32 to vector<24x1xf32>
    %139 = arith.addf %137, %138 : vector<24x1xf32>
    %140 = math.rsqrt %139 : vector<24x1xf32>
    %141 = vector.broadcast %140 : vector<24x1xf32> to vector<24x32xf32>
    %142 = arith.mulf %130, %141 : vector<24x32xf32>
    %143 = vector.broadcast %132 : vector<1x32xf32> to vector<24x32xf32>
    %144 = arith.mulf %142, %143 : vector<24x32xf32>
    %c0_62 = arith.constant 0 : index
    %c0_63 = arith.constant 0 : index
    %c0_64 = arith.constant 0 : index
    %145 = vector.load %arg14[%c0_62, %c0_63, %c0_64] : memref<2x32x64xbf16, #tpu.memory_space<vmem>>, vector<1x32x64xbf16>
    %146 = vector.shape_cast %145 : vector<1x32x64xbf16> to vector<32x64xbf16>
    %147 = arith.truncf %144 : vector<24x32xf32> to vector<24x32xbf16>
    %cst_65 = arith.constant dense<0.000000e+00> : vector<24x64xf32>
    %148 = tpu.matmul %147, %146, %cst_65 {dimension_numbers = #tpu.dot_dimension_numbers<[1], [0], [0], [1], [0, 0, 1, 1], [], []>} : vector<24x32xbf16>, vector<32x64xbf16>, vector<24x64xf32> -> vector<24x64xf32>
    %c0_66 = arith.constant 0 : index
    %c0_67 = arith.constant 0 : index
    %c0_68 = arith.constant 0 : index
    %149 = vector.load %arg15[%c0_66, %c0_67, %c0_68] : memref<2x32x64xbf16, #tpu.memory_space<vmem>>, vector<1x32x64xbf16>
    %150 = vector.shape_cast %149 : vector<1x32x64xbf16> to vector<32x64xbf16>
    %151 = arith.truncf %144 : vector<24x32xf32> to vector<24x32xbf16>
    %cst_69 = arith.constant dense<0.000000e+00> : vector<24x64xf32>
    %152 = tpu.matmul %151, %150, %cst_69 {dimension_numbers = #tpu.dot_dimension_numbers<[1], [0], [0], [1], [0, 0, 1, 1], [], []>} : vector<24x32xbf16>, vector<32x64xbf16>, vector<24x64xf32> -> vector<24x64xf32>
    %153 = arith.negf %148 : vector<24x64xf32>
    %154 = math.exp %153 : vector<24x64xf32>
    %cst_70 = arith.constant 1.000000e+00 : f32
    %155 = vector.broadcast %cst_70 : f32 to vector<24x64xf32>
    %156 = arith.addf %155, %154 : vector<24x64xf32>
    %157 = arith.divf %155, %156 : vector<24x64xf32>
    %158 = arith.mulf %148, %157 : vector<24x64xf32>
    %159 = arith.mulf %158, %152 : vector<24x64xf32>
    %c0_71 = arith.constant 0 : index
    %c0_72 = arith.constant 0 : index
    %c0_73 = arith.constant 0 : index
    %160 = vector.load %arg16[%c0_71, %c0_72, %c0_73] : memref<2x64x32xbf16, #tpu.memory_space<vmem>>, vector<1x64x32xbf16>
    %161 = vector.shape_cast %160 : vector<1x64x32xbf16> to vector<64x32xbf16>
    %162 = arith.truncf %159 : vector<24x64xf32> to vector<24x64xbf16>
    %cst_74 = arith.constant dense<0.000000e+00> : vector<24x32xf32>
    %163 = tpu.matmul %162, %161, %cst_74 {dimension_numbers = #tpu.dot_dimension_numbers<[1], [0], [0], [1], [0, 0, 1, 1], [], []>} : vector<24x64xbf16>, vector<64x32xbf16>, vector<24x32xf32> -> vector<24x32xf32>
    %164 = arith.addf %130, %163 : vector<24x32xf32>
    %c1 = arith.constant 1 : index
    %c0_75 = arith.constant 0 : index
    %c0_76 = arith.constant 0 : index
    %165 = vector.load %arg8[%c1, %c0_75, %c0_76] : memref<2x1x32xf32, #tpu.memory_space<vmem>>, vector<1x1x32xf32>
    %166 = vector.shape_cast %165 : vector<1x1x32xf32> to vector<1x32xf32>
    %167 = arith.mulf %164, %164 : vector<24x32xf32>
    %cst_77 = arith.constant dense<0.000000e+00> : vector<24xf32>
    %168 = vector.multi_reduction <add>, %167, %cst_77 [1] : vector<24x32xf32> to vector<24xf32>
    %169 = vector.shape_cast %168 : vector<24xf32> to vector<24x1xf32>
    %cst_78 = arith.constant 3.200000e+01 : f32
    %170 = vector.broadcast %cst_78 : f32 to vector<24x1xf32>
    %171 = arith.divf %169, %170 : vector<24x1xf32>
    %cst_79 = arith.constant 9.99999997E-7 : f32
    %172 = vector.broadcast %cst_79 : f32 to vector<24x1xf32>
    %173 = arith.addf %171, %172 : vector<24x1xf32>
    %174 = math.rsqrt %173 : vector<24x1xf32>
    %175 = vector.broadcast %174 : vector<24x1xf32> to vector<24x32xf32>
    %176 = arith.mulf %164, %175 : vector<24x32xf32>
    %177 = vector.broadcast %166 : vector<1x32xf32> to vector<24x32xf32>
    %178 = arith.mulf %176, %177 : vector<24x32xf32>
    %c1_80 = arith.constant 1 : index
    %c0_81 = arith.constant 0 : index
    %c0_82 = arith.constant 0 : index
    %179 = vector.load %arg9[%c1_80, %c0_81, %c0_82] : memref<2x32x32xbf16, #tpu.memory_space<vmem>>, vector<1x32x32xbf16>
    %180 = vector.shape_cast %179 : vector<1x32x32xbf16> to vector<32x32xbf16>
    %181 = arith.truncf %178 : vector<24x32xf32> to vector<24x32xbf16>
    %cst_83 = arith.constant dense<0.000000e+00> : vector<24x32xf32>
    %182 = tpu.matmul %181, %180, %cst_83 {dimension_numbers = #tpu.dot_dimension_numbers<[1], [0], [0], [1], [0, 0, 1, 1], [], []>} : vector<24x32xbf16>, vector<32x32xbf16>, vector<24x32xf32> -> vector<24x32xf32>
    %c1_84 = arith.constant 1 : index
    %c0_85 = arith.constant 0 : index
    %c0_86 = arith.constant 0 : index
    %183 = vector.load %arg10[%c1_84, %c0_85, %c0_86] : memref<2x32x32xbf16, #tpu.memory_space<vmem>>, vector<1x32x32xbf16>
    %184 = vector.shape_cast %183 : vector<1x32x32xbf16> to vector<32x32xbf16>
    %185 = arith.truncf %178 : vector<24x32xf32> to vector<24x32xbf16>
    %cst_87 = arith.constant dense<0.000000e+00> : vector<24x32xf32>
    %186 = tpu.matmul %185, %184, %cst_87 {dimension_numbers = #tpu.dot_dimension_numbers<[1], [0], [0], [1], [0, 0, 1, 1], [], []>} : vector<24x32xbf16>, vector<32x32xbf16>, vector<24x32xf32> -> vector<24x32xf32>
    %c1_88 = arith.constant 1 : index
    %c0_89 = arith.constant 0 : index
    %c0_90 = arith.constant 0 : index
    %187 = vector.load %arg11[%c1_88, %c0_89, %c0_90] : memref<2x32x32xbf16, #tpu.memory_space<vmem>>, vector<1x32x32xbf16>
    %188 = vector.shape_cast %187 : vector<1x32x32xbf16> to vector<32x32xbf16>
    %189 = arith.truncf %178 : vector<24x32xf32> to vector<24x32xbf16>
    %cst_91 = arith.constant dense<0.000000e+00> : vector<24x32xf32>
    %190 = tpu.matmul %189, %188, %cst_91 {dimension_numbers = #tpu.dot_dimension_numbers<[1], [0], [0], [1], [0, 0, 1, 1], [], []>} : vector<24x32xbf16>, vector<32x32xbf16>, vector<24x32xf32> -> vector<24x32xf32>
    %191 = arith.mulf %182, %8 : vector<24x32xf32>
    %192 = arith.truncf %182 : vector<24x32xf32> to vector<24x32xbf16>
    %cst_92 = arith.constant dense<0.000000e+00> : vector<24x32xf32>
    %193 = tpu.matmul %192, %10, %cst_92 {dimension_numbers = #tpu.dot_dimension_numbers<[1], [0], [0], [1], [0, 0, 1, 1], [], []>} : vector<24x32xbf16>, vector<32x32xbf16>, vector<24x32xf32> -> vector<24x32xf32>
    %194 = arith.mulf %193, %9 : vector<24x32xf32>
    %195 = arith.addf %191, %194 : vector<24x32xf32>
    %196 = arith.mulf %186, %8 : vector<24x32xf32>
    %197 = arith.truncf %186 : vector<24x32xf32> to vector<24x32xbf16>
    %cst_93 = arith.constant dense<0.000000e+00> : vector<24x32xf32>
    %198 = tpu.matmul %197, %10, %cst_93 {dimension_numbers = #tpu.dot_dimension_numbers<[1], [0], [0], [1], [0, 0, 1, 1], [], []>} : vector<24x32xbf16>, vector<32x32xbf16>, vector<24x32xf32> -> vector<24x32xf32>
    %199 = arith.mulf %198, %9 : vector<24x32xf32>
    %200 = arith.addf %196, %199 : vector<24x32xf32>
    %201 = vector.broadcast %22 : vector<1x32xf32> to vector<24x32xf32>
    %202 = arith.mulf %195, %201 : vector<24x32xf32>
    %203 = vector.broadcast %30 : vector<1x32xf32> to vector<24x32xf32>
    %204 = arith.mulf %195, %203 : vector<24x32xf32>
    %205 = vector.broadcast %38 : vector<1x32xf32> to vector<24x32xf32>
    %206 = arith.mulf %195, %205 : vector<24x32xf32>
    %207 = vector.broadcast %46 : vector<1x32xf32> to vector<24x32xf32>
    %208 = arith.mulf %195, %207 : vector<24x32xf32>
    %209 = tpu.concatenate %202, %204, %206, %208 in 0 : vector<24x32xf32>, vector<24x32xf32>, vector<24x32xf32>, vector<24x32xf32> -> vector<96x32xf32>
    %210 = arith.truncf %209 : vector<96x32xf32> to vector<96x32xbf16>
    %211 = arith.truncf %200 : vector<24x32xf32> to vector<24x32xbf16>
    %cst_94 = arith.constant dense<0.000000e+00> : vector<96x24xf32>
    %212 = tpu.matmul %210, %211, %cst_94 {dimension_numbers = #tpu.dot_dimension_numbers<[1], [1], [0], [0], [0, 0, 1, 0], [], []>} : vector<96x32xbf16>, vector<24x32xbf16>, vector<96x24xf32> -> vector<96x24xf32>
    %213 = arith.addf %212, %13 : vector<96x24xf32>
    %cst_95 = arith.constant dense<0xFF800000> : vector<96xf32>
    %214 = vector.multi_reduction <maximumf>, %213, %cst_95 [1] : vector<96x24xf32> to vector<96xf32>
    %215 = vector.shape_cast %214 : vector<96xf32> to vector<96x1xf32>
    %216 = vector.broadcast %215 : vector<96x1xf32> to vector<96x24xf32>
    %217 = arith.subf %213, %216 : vector<96x24xf32>
    %218 = math.exp %217 : vector<96x24xf32>
    %cst_96 = arith.constant dense<0.000000e+00> : vector<96xf32>
    %219 = vector.multi_reduction <add>, %218, %cst_96 [1] : vector<96x24xf32> to vector<96xf32>
    %220 = vector.shape_cast %219 : vector<96xf32> to vector<96x1xf32>
    %221 = tpu.reciprocal %220 {approx = true} : vector<96x1xf32> -> vector<96x1xf32>
    %222 = vector.broadcast %221 : vector<96x1xf32> to vector<96x24xf32>
    %223 = arith.mulf %218, %222 : vector<96x24xf32>
    %224 = arith.truncf %223 : vector<96x24xf32> to vector<96x24xbf16>
    %225 = arith.truncf %190 : vector<24x32xf32> to vector<24x32xbf16>
    %cst_97 = arith.constant dense<0.000000e+00> : vector<96x32xf32>
    %226 = tpu.matmul %224, %225, %cst_97 {dimension_numbers = #tpu.dot_dimension_numbers<[1], [0], [0], [1], [0, 0, 1, 1], [], []>} : vector<96x24xbf16>, vector<24x32xbf16>, vector<96x32xf32> -> vector<96x32xf32>
    %cst_98 = arith.constant 0.000000e+00 : f32
    %227 = vector.broadcast %cst_98 : f32 to vector<24x32xf32>
    %228 = vector.extract_strided_slice %226 {offsets = [0, 0], sizes = [24, 32], strides = [1, 1]} : vector<96x32xf32> to vector<24x32xf32>
    %229 = vector.broadcast %22 : vector<1x32xf32> to vector<24x32xf32>
    %230 = arith.mulf %228, %229 : vector<24x32xf32>
    %231 = arith.addf %227, %230 : vector<24x32xf32>
    %232 = vector.extract_strided_slice %226 {offsets = [24, 0], sizes = [24, 32], strides = [1, 1]} : vector<96x32xf32> to vector<24x32xf32>
    %233 = vector.broadcast %30 : vector<1x32xf32> to vector<24x32xf32>
    %234 = arith.mulf %232, %233 : vector<24x32xf32>
    %235 = arith.addf %231, %234 : vector<24x32xf32>
    %236 = vector.extract_strided_slice %226 {offsets = [48, 0], sizes = [24, 32], strides = [1, 1]} : vector<96x32xf32> to vector<24x32xf32>
    %237 = vector.broadcast %38 : vector<1x32xf32> to vector<24x32xf32>
    %238 = arith.mulf %236, %237 : vector<24x32xf32>
    %239 = arith.addf %235, %238 : vector<24x32xf32>
    %240 = vector.extract_strided_slice %226 {offsets = [72, 0], sizes = [24, 32], strides = [1, 1]} : vector<96x32xf32> to vector<24x32xf32>
    %241 = vector.broadcast %46 : vector<1x32xf32> to vector<24x32xf32>
    %242 = arith.mulf %240, %241 : vector<24x32xf32>
    %243 = arith.addf %239, %242 : vector<24x32xf32>
    %c1_99 = arith.constant 1 : index
    %c0_100 = arith.constant 0 : index
    %c0_101 = arith.constant 0 : index
    %244 = vector.load %arg12[%c1_99, %c0_100, %c0_101] : memref<2x32x32xbf16, #tpu.memory_space<vmem>>, vector<1x32x32xbf16>
    %245 = vector.shape_cast %244 : vector<1x32x32xbf16> to vector<32x32xbf16>
    %246 = arith.truncf %243 : vector<24x32xf32> to vector<24x32xbf16>
    %cst_102 = arith.constant dense<0.000000e+00> : vector<24x32xf32>
    %247 = tpu.matmul %246, %245, %cst_102 {dimension_numbers = #tpu.dot_dimension_numbers<[1], [0], [0], [1], [0, 0, 1, 1], [], []>} : vector<24x32xbf16>, vector<32x32xbf16>, vector<24x32xf32> -> vector<24x32xf32>
    %248 = arith.addf %164, %247 : vector<24x32xf32>
    %c1_103 = arith.constant 1 : index
    %c0_104 = arith.constant 0 : index
    %c0_105 = arith.constant 0 : index
    %249 = vector.load %arg13[%c1_103, %c0_104, %c0_105] : memref<2x1x32xf32, #tpu.memory_space<vmem>>, vector<1x1x32xf32>
    %250 = vector.shape_cast %249 : vector<1x1x32xf32> to vector<1x32xf32>
    %251 = arith.mulf %248, %248 : vector<24x32xf32>
    %cst_106 = arith.constant dense<0.000000e+00> : vector<24xf32>
    %252 = vector.multi_reduction <add>, %251, %cst_106 [1] : vector<24x32xf32> to vector<24xf32>
    %253 = vector.shape_cast %252 : vector<24xf32> to vector<24x1xf32>
    %cst_107 = arith.constant 3.200000e+01 : f32
    %254 = vector.broadcast %cst_107 : f32 to vector<24x1xf32>
    %255 = arith.divf %253, %254 : vector<24x1xf32>
    %cst_108 = arith.constant 9.99999997E-7 : f32
    %256 = vector.broadcast %cst_108 : f32 to vector<24x1xf32>
    %257 = arith.addf %255, %256 : vector<24x1xf32>
    %258 = math.rsqrt %257 : vector<24x1xf32>
    %259 = vector.broadcast %258 : vector<24x1xf32> to vector<24x32xf32>
    %260 = arith.mulf %248, %259 : vector<24x32xf32>
    %261 = vector.broadcast %250 : vector<1x32xf32> to vector<24x32xf32>
    %262 = arith.mulf %260, %261 : vector<24x32xf32>
    %c1_109 = arith.constant 1 : index
    %c0_110 = arith.constant 0 : index
    %c0_111 = arith.constant 0 : index
    %263 = vector.load %arg14[%c1_109, %c0_110, %c0_111] : memref<2x32x64xbf16, #tpu.memory_space<vmem>>, vector<1x32x64xbf16>
    %264 = vector.shape_cast %263 : vector<1x32x64xbf16> to vector<32x64xbf16>
    %265 = arith.truncf %262 : vector<24x32xf32> to vector<24x32xbf16>
    %cst_112 = arith.constant dense<0.000000e+00> : vector<24x64xf32>
    %266 = tpu.matmul %265, %264, %cst_112 {dimension_numbers = #tpu.dot_dimension_numbers<[1], [0], [0], [1], [0, 0, 1, 1], [], []>} : vector<24x32xbf16>, vector<32x64xbf16>, vector<24x64xf32> -> vector<24x64xf32>
    %c1_113 = arith.constant 1 : index
    %c0_114 = arith.constant 0 : index
    %c0_115 = arith.constant 0 : index
    %267 = vector.load %arg15[%c1_113, %c0_114, %c0_115] : memref<2x32x64xbf16, #tpu.memory_space<vmem>>, vector<1x32x64xbf16>
    %268 = vector.shape_cast %267 : vector<1x32x64xbf16> to vector<32x64xbf16>
    %269 = arith.truncf %262 : vector<24x32xf32> to vector<24x32xbf16>
    %cst_116 = arith.constant dense<0.000000e+00> : vector<24x64xf32>
    %270 = tpu.matmul %269, %268, %cst_116 {dimension_numbers = #tpu.dot_dimension_numbers<[1], [0], [0], [1], [0, 0, 1, 1], [], []>} : vector<24x32xbf16>, vector<32x64xbf16>, vector<24x64xf32> -> vector<24x64xf32>
    %271 = arith.negf %266 : vector<24x64xf32>
    %272 = math.exp %271 : vector<24x64xf32>
    %cst_117 = arith.constant 1.000000e+00 : f32
    %273 = vector.broadcast %cst_117 : f32 to vector<24x64xf32>
    %274 = arith.addf %273, %272 : vector<24x64xf32>
    %275 = arith.divf %273, %274 : vector<24x64xf32>
    %276 = arith.mulf %266, %275 : vector<24x64xf32>
    %277 = arith.mulf %276, %270 : vector<24x64xf32>
    %c1_118 = arith.constant 1 : index
    %c0_119 = arith.constant 0 : index
    %c0_120 = arith.constant 0 : index
    %278 = vector.load %arg16[%c1_118, %c0_119, %c0_120] : memref<2x64x32xbf16, #tpu.memory_space<vmem>>, vector<1x64x32xbf16>
    %279 = vector.shape_cast %278 : vector<1x64x32xbf16> to vector<64x32xbf16>
    %280 = arith.truncf %277 : vector<24x64xf32> to vector<24x64xbf16>
    %cst_121 = arith.constant dense<0.000000e+00> : vector<24x32xf32>
    %281 = tpu.matmul %280, %279, %cst_121 {dimension_numbers = #tpu.dot_dimension_numbers<[1], [0], [0], [1], [0, 0, 1, 1], [], []>} : vector<24x64xbf16>, vector<64x32xbf16>, vector<24x32xf32> -> vector<24x32xf32>
    %282 = arith.addf %248, %281 : vector<24x32xf32>
    %c0_122 = arith.constant 0 : index
    %c0_123 = arith.constant 0 : index
    %283 = vector.load %arg17[%c0_122, %c0_123] : memref<1x32xf32, #tpu.memory_space<vmem>>, vector<1x32xf32>
    %284 = arith.mulf %282, %282 : vector<24x32xf32>
    %cst_124 = arith.constant dense<0.000000e+00> : vector<24xf32>
    %285 = vector.multi_reduction <add>, %284, %cst_124 [1] : vector<24x32xf32> to vector<24xf32>
    %286 = vector.shape_cast %285 : vector<24xf32> to vector<24x1xf32>
    %cst_125 = arith.constant 3.200000e+01 : f32
    %287 = vector.broadcast %cst_125 : f32 to vector<24x1xf32>
    %288 = arith.divf %286, %287 : vector<24x1xf32>
    %cst_126 = arith.constant 9.99999997E-7 : f32
    %289 = vector.broadcast %cst_126 : f32 to vector<24x1xf32>
    %290 = arith.addf %288, %289 : vector<24x1xf32>
    %291 = math.rsqrt %290 : vector<24x1xf32>
    %292 = vector.broadcast %291 : vector<24x1xf32> to vector<24x32xf32>
    %293 = arith.mulf %282, %292 : vector<24x32xf32>
    %294 = vector.broadcast %283 : vector<1x32xf32> to vector<24x32xf32>
    %295 = arith.mulf %293, %294 : vector<24x32xf32>
    %c0_127 = arith.constant 0 : index
    %c0_128 = arith.constant 0 : index
    %296 = vector.load %arg18[%c0_127, %c0_128] : memref<32x128xbf16, #tpu.memory_space<vmem>>, vector<32x128xbf16>
    %297 = arith.truncf %295 : vector<24x32xf32> to vector<24x32xbf16>
    %cst_129 = arith.constant dense<0.000000e+00> : vector<24x128xf32>
    %298 = tpu.matmul %297, %296, %cst_129 {dimension_numbers = #tpu.dot_dimension_numbers<[1], [0], [0], [1], [0, 0, 1, 1], [], []>} : vector<24x32xbf16>, vector<32x128xbf16>, vector<24x128xf32> -> vector<24x128xf32>
    %c0_130 = arith.constant 0 : index
    %c0_131 = arith.constant 0 : index
    %c0_132 = arith.constant 0 : index
    %299 = vector.load %arg19[%c0_130, %c0_131, %c0_132] : memref<1x24x128xf32, #tpu.memory_space<vmem>>, vector<1x24x128xf32>
    %300 = vector.shape_cast %299 : vector<1x24x128xf32> to vector<24x128xf32>
    %301 = vector.shape_cast %298 : vector<24x128xf32> to vector<1x24x128xf32>
    tpu.vector_store %arg19[%c0_130, %c0_131, %c0_132], %301 {strides = array<i32>} : memref<1x24x128xf32, #tpu.memory_space<vmem>>, vector<1x24x128xf32>,
    return
  }
  func.func @transform_0(%arg0: i32) -> (i32, i32, i32) {
    %c0_i32 = arith.constant 0 : i32
    %c0_i32_0 = arith.constant 0 : i32
    %c0_i32_1 = arith.constant 0 : i32
    return %arg0, %c0_i32, %c0_i32_0 : i32, i32, i32
  }
  func.func @transform_1(%arg0: i32) -> (i32, i32) {
    %c0_i32 = arith.constant 0 : i32
    %c0_i32_0 = arith.constant 0 : i32
    %c0_i32_1 = arith.constant 0 : i32
    return %c0_i32, %c0_i32_0 : i32, i32
  }
  func.func @transform_2(%arg0: i32) -> (i32, i32, i32) {
    %c0_i32 = arith.constant 0 : i32
    %c0_i32_0 = arith.constant 0 : i32
    %c0_i32_1 = arith.constant 0 : i32
    return %arg0, %c0_i32, %c0_i32_0 : i32, i32, i32
  }
  func.func @transform_3(%arg0: i32) -> (i32, i32, i32) {
    %c0_i32 = arith.constant 0 : i32
    %c0_i32_0 = arith.constant 0 : i32
    %c0_i32_1 = arith.constant 0 : i32
    return %arg0, %c0_i32, %c0_i32_0 : i32, i32, i32
  }
  func.func @transform_4(%arg0: i32) -> (i32, i32) {
    %c0_i32 = arith.constant 0 : i32
    %c0_i32_0 = arith.constant 0 : i32
    %c0_i32_1 = arith.constant 0 : i32
    return %c0_i32, %c0_i32_0 : i32, i32
  }
  func.func @transform_5(%arg0: i32) -> (i32, i32) {
    %c0_i32 = arith.constant 0 : i32
    %c0_i32_0 = arith.constant 0 : i32
    %c0_i32_1 = arith.constant 0 : i32
    return %c0_i32, %c0_i32_0 : i32, i32
  }
  func.func @transform_6(%arg0: i32) -> (i32, i32) {
    %c0_i32 = arith.constant 0 : i32
    %c0_i32_0 = arith.constant 0 : i32
    %c0_i32_1 = arith.constant 0 : i32
    return %c0_i32, %c0_i32_0 : i32, i32
  }
  func.func @transform_7(%arg0: i32) -> (i32, i32, i32) {
    %c0_i32 = arith.constant 0 : i32
    %c0_i32_0 = arith.constant 0 : i32
    %c0_i32_1 = arith.constant 0 : i32
    %c0_i32_2 = arith.constant 0 : i32
    return %c0_i32, %c0_i32_0, %c0_i32_1 : i32, i32, i32
  }
  func.func @transform_8(%arg0: i32) -> (i32, i32, i32) {
    %c0_i32 = arith.constant 0 : i32
    %c0_i32_0 = arith.constant 0 : i32
    %c0_i32_1 = arith.constant 0 : i32
    %c0_i32_2 = arith.constant 0 : i32
    return %c0_i32, %c0_i32_0, %c0_i32_1 : i32, i32, i32
  }
  func.func @transform_9(%arg0: i32) -> (i32, i32, i32) {
    %c0_i32 = arith.constant 0 : i32
    %c0_i32_0 = arith.constant 0 : i32
    %c0_i32_1 = arith.constant 0 : i32
    %c0_i32_2 = arith.constant 0 : i32
    return %c0_i32, %c0_i32_0, %c0_i32_1 : i32, i32, i32
  }
  func.func @transform_10(%arg0: i32) -> (i32, i32, i32) {
    %c0_i32 = arith.constant 0 : i32
    %c0_i32_0 = arith.constant 0 : i32
    %c0_i32_1 = arith.constant 0 : i32
    %c0_i32_2 = arith.constant 0 : i32
    return %c0_i32, %c0_i32_0, %c0_i32_1 : i32, i32, i32
  }
  func.func @transform_11(%arg0: i32) -> (i32, i32, i32) {
    %c0_i32 = arith.constant 0 : i32
    %c0_i32_0 = arith.constant 0 : i32
    %c0_i32_1 = arith.constant 0 : i32
    %c0_i32_2 = arith.constant 0 : i32
    return %c0_i32, %c0_i32_0, %c0_i32_1 : i32, i32, i32
  }
  func.func @transform_12(%arg0: i32) -> (i32, i32, i32) {
    %c0_i32 = arith.constant 0 : i32
    %c0_i32_0 = arith.constant 0 : i32
    %c0_i32_1 = arith.constant 0 : i32
    %c0_i32_2 = arith.constant 0 : i32
    return %c0_i32, %c0_i32_0, %c0_i32_1 : i32, i32, i32
  }
  func.func @transform_13(%arg0: i32) -> (i32, i32, i32) {
    %c0_i32 = arith.constant 0 : i32
    %c0_i32_0 = arith.constant 0 : i32
    %c0_i32_1 = arith.constant 0 : i32
    %c0_i32_2 = arith.constant 0 : i32
    return %c0_i32, %c0_i32_0, %c0_i32_1 : i32, i32, i32
  }
  func.func @transform_14(%arg0: i32) -> (i32, i32, i32) {
    %c0_i32 = arith.constant 0 : i32
    %c0_i32_0 = arith.constant 0 : i32
    %c0_i32_1 = arith.constant 0 : i32
    %c0_i32_2 = arith.constant 0 : i32
    return %c0_i32, %c0_i32_0, %c0_i32_1 : i32, i32, i32
  }
  func.func @transform_15(%arg0: i32) -> (i32, i32, i32) {
    %c0_i32 = arith.constant 0 : i32
    %c0_i32_0 = arith.constant 0 : i32
    %c0_i32_1 = arith.constant 0 : i32
    %c0_i32_2 = arith.constant 0 : i32
    return %c0_i32, %c0_i32_0, %c0_i32_1 : i32, i32, i32
  }
  func.func @transform_16(%arg0: i32) -> (i32, i32) {
    %c0_i32 = arith.constant 0 : i32
    %c0_i32_0 = arith.constant 0 : i32
    %c0_i32_1 = arith.constant 0 : i32
    return %c0_i32, %c0_i32_0 : i32, i32
  }
  func.func @transform_17(%arg0: i32) -> (i32, i32) {
    %c0_i32 = arith.constant 0 : i32
    %c0_i32_0 = arith.constant 0 : i32
    %c0_i32_1 = arith.constant 0 : i32
    return %c0_i32, %c0_i32_0 : i32, i32
  }
  func.func @transform_18(%arg0: i32) -> (i32, i32, i32) {
    %c0_i32 = arith.constant 0 : i32
    %c0_i32_0 = arith.constant 0 : i32
    %c0_i32_1 = arith.constant 0 : i32
    return %arg0, %c0_i32, %c0_i32_0 : i32, i32, i32
  }
}

</mosaic_0001>

<bundles_post_ra>
// kernel: vox_instruct_ar_forward.1
= control target key start
LH: loop header
LB: loop body
LE: loop exit
PB: predicated region body
PF: predicated region fallthrough
CT: control target
= control target key end

     0   :  { %s4799_s0 = inlined_call_operand.vmem [shape: f32[2,24,48], index: 0, kind: input, shape index: {}]   ;;  %s4800_s1 = inlined_call_operand.vmem [shape: bf16[48,32], index: 1, kind: input, shape index: {}]   ;;  %s4801_s2 = inlined_call_operand.vmem [shape: f32[2,24,32], index: 2, kind: input, shape index: {}]   ;;  %s4802_s3 = inlined_call_operand.vmem [shape: f32[2,24,24], index: 3, kind: input, shape index: {}]   ;;  %s4803_s4 = inlined_call_operand.vmem [shape: f32[24,32], index: 4, kind: input, shape index: {}]   ;;  %s4804_s5 = inlined_call_operand.vmem [shape: f32[24,32], index: 5, kind: input, shape index: {}]   ;;  %s4805_s6 = inlined_call_operand.vmem [shape: bf16[32,32], index: 6, kind: input, shape index: {}]   ;;  %s4806_s7 = inlined_call_operand.vmem [shape: f32[2,1,32], index: 7, kind: input, shape index: {}, may-alias: {7,12}]   ;;  %s4807_s8 = inlined_call_operand.vmem [shape: bf16[2,32,32], index: 8, kind: input, shape index: {}]   ;;  %s4808_s9 = inlined_call_operand.vmem [shape: bf16[2,32,32], index: 9, kind: input, shape index: {}]   ;;  %s4809_s10 = inlined_call_operand.vmem [shape: bf16[2,32,32], index: 10, kind: input, shape index: {}]   ;;  %s4810_s11 = inlined_call_operand.vmem [shape: bf16[2,32,32], index: 11, kind: input, shape index: {}]   ;;  %s4811_s12 = inlined_call_operand.vmem [shape: f32[2,1,32], index: 12, kind: input, shape index: {}, may-alias: {7,12}]   ;;  %s4812_s13 = inlined_call_operand.vmem [shape: bf16[2,32,64], index: 13, kind: input, shape index: {}]   ;;  %s4813_s14 = inlined_call_operand.vmem [shape: bf16[2,32,64], index: 14, kind: input, shape index: {}]   ;;  %s4814_s15 = inlined_call_operand.vmem [shape: bf16[2,64,32], index: 15, kind: input, shape index: {}]   ;;  %s4815_s16 = inlined_call_operand.vmem [shape: f32[1,32], index: 16, kind: input, shape index: {}]   ;;  %s4816_s17 = inlined_call_operand.vmem [shape: bf16[32,128], index: 17, kind: input, shape index: {}]   ;;  %s4817_s18 = inlined_call_operand.hbm [shape: f32[2,24,128], index: 18, kind: output, shape index: {}]  }
   0x1   :  { %4824 = sst [smem:[#allocation10_spill]] %s4799_s0 }
   0x2   :  { %4825 = sst [smem:[#allocation11_spill]] %s4800_s1 }
   0x3   :  { %4826 = sst [smem:[#allocation12_spill]] %s4801_s2 }
   0x4   :  { %4827 = sst [smem:[#allocation13_spill]] %s4802_s3 }
   0x5   :  { %23 = vsyncpa [#allocation3], 0 }
   0x6   :  { %25 = vsyncpa [#allocation3 + $0x1], 0  ;;  %s4124_s27 = smov 0   ;;  %s4126_s28 = smov 0  }
   0x7   :  { %s4128_s29 = smov 0   ;;  %s4130_s30 = smov 0  }
   0x8 LB: > { %4828 = sst [smem:[#allocation5_spill]] %s4011_s27  ;;  %s4145_s0 = sadd.s32 4294967295, %s4023_s30   ;;  %s4023_s30 = sphi %s4130_s30, %s4841_s30   ;;  %s4019_s29 = sphi %s4128_s29, %s4843_s29   ;;  %s4015_s28 = sphi %s4126_s28, %s4845_s28   ;;  %s4011_s27 = sphi %s4124_s27, %s4844_s27  }
   0x9   : > { %4829 = sst [smem:[#allocation6_spill]] %s4019_s29  ;;  %s3201_s19 = sadd.s32 4294967294, %s4023_s30  }
   0xa   : > { %s4149_s1 = sadd.s32 1, %s4023_s30   ;;  %s431_s20 = sadd.s32 1, %s4019_s29 }
   0xb   : > { %4830 = sst [smem:[#allocation7_spill]] %s4149_s1  ;;  %s428_s21 = ssub.s32 %s4023_s30, %s4149_s1 }
   0xc   : > { %p441_p0 = scmp.ne.s32.totalorder %s4019_s29, %s4015_s28  ;;  %p429_p1 = scmp.eq.s32.totalorder %s428_s21, 0 }
   0xd   : > { %p442_p2 = scmp.eq.s32.totalorder %s4145_s0, 1  ;;  %p447_p3 = scmp.ne.s32.totalorder %s4015_s28, %s4011_s27 }
   0xe   : > { %p448_p4 = scmp.eq.s32.totalorder %s3201_s19, 1  ;;  %p3204_p7 = scmp.ge.s32.totalorder %s4023_s30, 1 }
   0xf   : > { %s4160_s22 = scalar_select %p429_p1, %s4019_s29, %s431_s20  }
  0x10   : > { %p4162_p5 = por %p442_p2, %p441_p0  ;;  %p4166_p6 = por %p448_p4, %p447_p3 }
  0x11   : > { %4831 = sst [smem:[#allocation8_spill]] %s4160_s22  ;;  %p535_p8 = scmp.lt.s32.totalorder %s4023_s30, 3 }
  0x12   : > { %s4833_s23 = scalar_select %p4166_p6, 1, 0 }
  0x13   : > { %p536_p9 = pnand %p3204_p7, %p535_p8 }
  0x14   : > { %4834 = sst [smem:[#allocation9_spill]] %s4833_s23  ;;  %s4835_s26 = sld [smem:[#allocation11_spill]] (!%p536_p9)  ;;  %vm647_vm0 = vcmask (!%p536_p9), 392192   ;;  %vm740_vm1 = vcmask (!%p536_p9), 261120   ;;  %v3764_v24 = vld [vmem:[%s4807_s8] sm:$0xff] (!%p536_p9)   ;;  %v3766_v26 = vld [vmem:[%s4807_s8 + $0x8] sm:$0xff] (!%p536_p9)  }
  0x15   : > { %539 = sbr.rel (%p536_p9) target bundleno = 5167 (0x142f), region = 92  ;;  %p599_p10 = scmp.lt.s32.totalorder (!%p536_p9), %s4145_s0, 1  ;;  %v3765_v25 = vld [vmem:[%s4809_s10] sm:$0xff] (!%p536_p9)   ;;  %v3767_v27 = vld [vmem:[%s4809_s10 + $0x8] sm:$0xff] (!%p536_p9)   ;;  %3486 = vmatprep.subr.bf16.mxu1 (!%p536_p9), %v3764_v24  ;;  %vm1398_vm2 = vcmask (!%p536_p9), 1043456   ;;  %vm1239_vm13 = vcmask (!%p536_p9), 195584  }
  0x16   : > { %s4836_s23 = sld [smem:[#allocation10_spill]] (!%p536_p9)  ;;  %s4837_s19 = sld [smem:[#allocation12_spill]] (!%p536_p9)  ;;  %3487 = vmatpush3.bf16.msra.mxu1 (!%p536_p9), %v3764_v24  ;;  %v3768_v28 = vld [vmem:[%s4808_s9] sm:$0xff] (!%p536_p9)   ;;  %v3769_v51 = vld [vmem:[%s4808_s9 + $0x8] sm:$0xff] (!%p536_p9)   ;;  %v4025_v24 = vmov (!%p536_p9), 0.0   ;;  %vm1810_vm14 = vcmask (!%p536_p9), 523264  }
  0x17   : > { %3488 = vmatprep.subr.bf16.mxu1 (!%p536_p9), %v3766_v26  ;;  %v3770_v29 = vld [vmem:[%s4805_s6] sm:$0xff] (!%p536_p9)   ;;  %v3771_v52 = vld [vmem:[%s4805_s6 + $0x8] sm:$0xff] (!%p536_p9)   ;;  %s4838_s3 = sld [smem:[#allocation13_spill]] (!%p536_p9)  ;;  %s3718_s25 = smul.u32 (!%p536_p9), 384, %s4145_s0 }
  0x18   : > { %v3213_v42 = vld [vmem:[%s4806_s7] ss:$0 sm:$0xff] (!%p536_p9) }
  0x1a   : > { %v3761_v0 = vld [vmem:[%s4835_s26] sm:$0xff] (!%p536_p9)   ;;  %v3762_v1 = vld [vmem:[%s4835_s26 + $0x8] sm:$0xff] (!%p536_p9)   ;;  %v3763_v2 = vld [vmem:[%s4835_s26 + $0x10] sm:$0xff] (!%p536_p9)   ;;  %3489 = vmatpush3.bf16.msra.mxu1 (!%p536_p9), %v3766_v26 }
  0x1b   : > { %3476 = vmatprep.subr.bf16.mxu0 (!%p536_p9), %v3761_v0  ;;  %3494 = vmatprep.subr.bf16.mxu1 (!%p536_p9), %v3768_v28 }
  0x1c   : > { %s600_s21 = scalar_select %p599_p10, %s4145_s0, 1  ;;  %3477 = vmatpush3.bf16.msra.mxu0 %v3761_v0 }
  0x1d   : > { %3478 = vmatprep.subr.bf16.mxu0 %v3762_v1 }
  0x1e   : > { %s4183_s1 = smul.u32 24, %s600_s21 }
  0x20   : > { %s603_s27 = scalar_lea.vmem %s4836_s23, %s4183_s1  ;;  %3479 = vmatpush3.bf16.msra.mxu0 %v3762_v1  ;;  %s608_s20 = scalar_lea.vmem %s4837_s19, %s4183_s1 }
  0x21   : > { %v618_v3 = vld [vmem:[%s603_s27] sm:$0xff]  ;;  %v619_v4 = vld [vmem:[%s603_s27 + $0x8] sm:$0xff]  ;;  %v620_v5 = vld [vmem:[%s603_s27 + $0x10] sm:$0xff]  ;;  %3480 = vmatprep.subr.bf16.mxu0 %v3763_v2  ;;  %s4306_s29 = scalar_lea.vmem %s4838_s3, %s4183_s1  ;;  %s596_s23 = sand.u32 1, %s4015_s28  }
  0x22   : > { %v627_v6 = vpack.c.bf16 %v619_v4, %v618_v3  ;;  %v628_v7 = vpack.c.bf16 %v620_v5, %v620_v5  ;;  %v617_v8 = vld [vmem:[%s608_s20 + $0x10] sm:$0xff]  ;;  %v615_v9 = vld [vmem:[%s608_s20] sm:$0xff]  ;;  %v616_v13 = vld [vmem:[%s608_s20 + $0x8] sm:$0xff]  ;;  %s3716_s21 = smul.u32 24, %s596_s23  ;;  %s4756_s19 = scalar_lea.hbm %s4817_s18, %s3718_s25 }
  0x23   : > { %s4758_s20 = scalar_lea.sflag [#allocation3], %s596_s23  ;;  %s4026_s27 = smov [#allocation2]  }
  0x24   : > { %3482 = vmatprep.mubr.msk.bf16.mxu0 %vm647_vm0, %v627_v6  ;;  %3481 = vmatpush3.bf16.msra.mxu0 %v3763_v2 }
  0x25   : > { %3502 = vmatprep.subr.bf16.mxu0 %v3765_v25 }
  0x27   : > { %3483 = vmatmul.mubr.msk.bf16.vlgmr.msra.gmra.mrb[0].mxu0 %vm647_vm0, %v628_v7 }
  0x28   : > { %3503 = vmatpush3.bf16.msra.mxu0 %v3765_v25 }
  0x29   : > { %3504 = vmatprep.subr.bf16.mxu0 %v3767_v27 }
  0x2c   : > { %3505 = vmatpush3.bf16.msra.mxu0 %v3767_v27 }
  0x2d   : > { %3518 = vmatprep.subr.bf16.mxu0 %v3770_v29 }
  0xfa   : > { %v3484_v10 = vpop.f32.mrb[0].mxu0 }
  0xfb   : > { %v4193_v11 = vadd.f32 %v3484_v10, %v617_v8  ;;  %v688_v12 = vpop.f32.mrb[1].mxu0  ;;  %v718_v8 = vlaneseq  ;;  %v707_v10 = vld [vmem:[%s4803_s4 + $0x10] sm:$0xff] }
  0xfc   : > { %v4195_v14 = vadd.f32 %v688_v12, %v615_v9  ;;  %v3485_v15 = vpop.f32.mrb[2].mxu0  ;;  %v710_v12 = vld [vmem:[%s4804_s5 + $0x10] sm:$0xff] }
  0xfd   : > { %v691_v16 = vpop.f32.mrb[3].mxu0  ;;  %v739_v17 = vmul.f32 %v4193_v11, %v4193_v11  ;;  %v719_v9 = vand.u32 127, %v718_v8  ;;  %v708_v15 = vld [vmem:[%s4804_s5] sm:$0xff] }
  0xfe   : > { %v4199_v18 = vadd.f32 %v691_v16, %v616_v13  ;;  %v737_v19 = vmul.f32 %v4195_v14, %v4195_v14  ;;  %v705_v13 = vld [vmem:[%s4803_s4] sm:$0xff] }
  0xff   : > { %v747_v20 = vsel %vm740_vm1, %v739_v17, 0.0  ;;  %vm728_vm3 = vcmp.ge.s32.totalorder %v719_v9, 16  ;;  %vm729_vm4 = vcmp.lt.s32.totalorder %v719_v9, 24  ;;  %vm724_vm5 = vcmp.ge.s32.totalorder %v719_v9, 8 }
 0x100   : > { %748 = vadd.xlane.f32.xlu1 %v747_v20  ;;  %v741_v21 = vsel %vm740_vm1, %v737_v19, 0.0  ;;  %v738_v22 = vmul.f32 %v4199_v18, %v4199_v18  ;;  %vm725_vm6 = vcmp.lt.s32.totalorder %v719_v9, 16  ;;  %vm732_vm7 = vcmp.ge.s32.totalorder %v719_v9, 24  ;;  %vm730_vm10 = vmand %vm728_vm3, %vm729_vm4  ;;  %v706_v19 = vld [vmem:[%s4803_s4 + $0x8] sm:$0xff] }
 0x101   : > { %742 = vadd.xlane.f32.xlu0 %v741_v21  ;;  %vm733_vm8 = vcmp.lt.s32.totalorder %v719_v9, 32  ;;  %vm721_vm9 = vcmp.lt.s32.totalorder %v719_v9, 8  ;;  %vm726_vm11 = vmand %vm724_vm5, %vm725_vm6 }
 0x102   : > { %v744_v23 = vsel %vm740_vm1, %v738_v22, 0.0  ;;  %v709_v22 = vld [vmem:[%s4804_s5 + $0x8] sm:$0xff]  ;;  %vm734_vm12 = vmand %vm732_vm7, %vm733_vm8  ;;  %v4271_v25 = vsel %vm721_vm9, 1.0, %v4025_v24 }
 0x105   : > { %745 = vadd.xlane.f32.xlu0 %v744_v23 }
 0x18d   : > { %v749_v30 = vpop.xlane.xlu1 %748 }
 0x18e   : > { %v753_v31 = vmul.f32 0.03125, %v749_v30  ;;  %v743_v32 = vpop.xlane.xlu0 %742  ;;  %v4275_v30 = vsel %vm726_vm11, 1.0, %v4025_v24 }
 0x18f   : > { %v751_v33 = vmul.f32 0.03125, %v743_v32 }
 0x190   : > { %v756_v34 = vadd.f32 1e-06, %v753_v31 }
 0x191   : > { %v754_v35 = vadd.f32 1e-06, %v751_v33 }
 0x192   : > { %3800 = vrsqrt.f32 %v756_v34  ;;  %v746_v36 = vpop.xlane.xlu0 %745 }
 0x193   : > { %3802 = vrsqrt.f32 %v754_v35  ;;  %v752_v37 = vmul.f32 0.03125, %v746_v36  ;;  %v4277_v35 = vsel %vm734_vm12, 1.0, %v4025_v24 }
 0x195   : > { %v755_v38 = vadd.f32 1e-06, %v752_v37 }
 0x197   : > { %3804 = vrsqrt.f32 %v755_v38 }
 0x19c   : > { %v3801_v39 = vpop.eup %3800 }
 0x19d   : > { %v3803_v40 = vpop.eup %3802  ;;  %v762_v41 = vmul.f32 %v3801_v39, %v4193_v11 }
 0x19e   : > { %v760_v43 = vmul.f32 %v3803_v40, %v4195_v14 }
 0x19f   : > { %v771_v46 = vmul.f32 %v3213_v42, %v762_v41 }
 0x1a0   : > { %v769_v47 = vmul.f32 %v3213_v42, %v760_v43 }
 0x1a1   : > { %v3805_v44 = vpop.eup %3804  ;;  %v777_v50 = vpack.c.bf16 %v771_v46, %v771_v46 }
 0x1a2   : > { %v761_v45 = vmul.f32 %v3805_v44, %v4199_v18 }
 0x1a4   : > { %v770_v48 = vmul.f32 %v3213_v42, %v761_v45 }
 0x1a6   : > { %v776_v49 = vpack.c.bf16 %v770_v48, %v769_v47 }
 0x1a8   : > { %3490 = vmatprep.mubr.msk.bf16.mxu1 %vm740_vm1, %v776_v49  ;;  %3506 = vmatprep.mubr.msk.bf16.mxu0 %vm740_vm1, %v776_v49 }
 0x1a9   : > { %3491 = vmatmul.mubr.msk.bf16.vlgmr.msra.gmra.mrb[0].mxu1 %vm740_vm1, %v777_v50  ;;  %3507 = vmatmul.mubr.msk.bf16.vlgmr.msra.gmra.mrb[4].mxu0 %vm740_vm1, %v777_v50 }
 0x1aa   : > { %3495 = vmatpush3.bf16.msra.mxu1 %v3768_v28  ;;  %3498 = vmatprep.mubr.msk.bf16.mxu1 %vm740_vm1, %v776_v49  ;;  %v4273_v28 = vsel %vm730_vm10, 1.0, %v4025_v24 }
 0x1ab   : > { %3496 = vmatprep.subr.bf16.mxu1 %v3769_v51  ;;  %3519 = vmatpush3.bf16.msra.mxu0 %v3770_v29 }
 0x1ac   : > { %3520 = vmatprep.subr.bf16.mxu0 %v3771_v52 }
 0x1ae   : > { %3497 = vmatpush3.bf16.msra.mxu1 %v3769_v51 }
 0x1af   : > { %3510 = vmatprep.subr.bf16.mxu1 %v3770_v29  ;;  %3521 = vmatpush3.bf16.msra.mxu0 %v3771_v52 }
 0x1b1   : > { %3499 = vmatmul.mubr.msk.bf16.vlgmr.msra.gmra.mrb[4].mxu1 %vm740_vm1, %v777_v50 }
 0x1b2   : > { %3511 = vmatpush3.bf16.msra.mxu1 %v3770_v29 }
 0x1b3   : > { %3512 = vmatprep.subr.bf16.mxu1 %v3771_v52 }
 0x1b6   : > { %3513 = vmatpush3.bf16.msra.mxu1 %v3771_v52 }
 0x27c   : > { %v3492_v53 = vpop.f32.mrb[0].mxu1  ;;  %v3508_v54 = vpop.f32.mrb[4].mxu0 }
 0x27d   : > { %v830_v55 = vpop.f32.mrb[1].mxu1  ;;  %v958_v56 = vpop.f32.mrb[5].mxu0  ;;  %v976_v63 = vpack.c.bf16 %v3492_v53, %v3492_v53  ;;  %v1379_v6 = vpack.c.bf16 %v3508_v54, %v3508_v54  ;;  %v974_v17 = vmul.f32 %v3492_v53, %v707_v10 }
 0x27e   : > { %v3493_v57 = vpop.f32.mrb[2].mxu1  ;;  %v3509_v58 = vpop.f32.mrb[6].mxu0  ;;  %v972_v23 = vmul.f32 %v830_v55, %v705_v13 }
 0x27f   : > { %v833_v59 = vpop.f32.mrb[3].mxu1  ;;  %v961_v60 = vpop.f32.mrb[7].mxu0  ;;  %v1400_v7 = vsel %vm1398_vm2, %v1379_v6, 0 }
 0x280   : > { %v975_v61 = vpack.c.bf16 %v833_v59, %v830_v55  ;;  %v1378_v62 = vpack.c.bf16 %v961_v60, %v958_v56  ;;  %v973_v32 = vmul.f32 %v833_v59, %v706_v19 }
 0x282   : > { %3514 = vmatprep.mubr.msk.bf16.mxu1 %vm740_vm1, %v975_v61  ;;  %3542 = vmatprep.subr.bf16.mxu0 %v1378_v62 }
 0x283   : > { %3515 = vmatmul.mubr.msk.bf16.vlgmr.msra.gmra.mrb[8].mxu1 %vm740_vm1, %v976_v63 }
 0x284   : > { %v3500_v0 = vpop.f32.mrb[4].mxu1 }
 0x285   : > { %v894_v1 = vpop.f32.mrb[5].mxu1  ;;  %v1053_v5 = vpack.c.bf16 %v3500_v0, %v3500_v0  ;;  %v1051_v38 = vmul.f32 %v3500_v0, %v707_v10  ;;  %v4312_v10 = vld [vmem:[%s4306_s29 + $0x8] sm:$0xff] }
 0x286   : > { %v3501_v2 = vpop.f32.mrb[6].mxu1  ;;  %v1049_v39 = vmul.f32 %v894_v1, %v705_v13 }
 0x287   : > { %v4246_v3 = vpop.f32.mrb[7].mxu1 }
 0x288   : > { %v1052_v4 = vpack.c.bf16 %v4246_v3, %v894_v1  ;;  %v1050_v0 = vmul.f32 %v4246_v3, %v706_v19  ;;  %v4309_v3 = vld [vmem:[%s4306_s29] sm:$0xff] }
 0x28a   : > { %3522 = vmatprep.mubr.msk.bf16.mxu0 %vm740_vm1, %v1052_v4 }
 0x28b   : > { %3523 = vmatmul.mubr.msk.bf16.vlgmr.msra.gmra.mrb[8].mxu0 %vm740_vm1, %v1053_v5 }
 0x28c   : > { %3543 = vmatpush3.bf16.msra.mxu0 %v1378_v62 }
 0x28d   : > { %3712 = vmatprep.subr.msk.bf16.mxu0 %vm1398_vm2, %v1379_v6 }
 0x290   : > { %3545 = vmatpush3.bf16.msra.mxu0 %v1400_v7 }
 0x356   : > { %v3516_v16 = vpop.f32.mrb[8].mxu1 }
 0x357   : > { %v1045_v20 = vmul.f32 %v3516_v16, %v710_v12  ;;  %v1029_v21 = vpop.f32.mrb[9].mxu1 }
 0x358   : > { %v1043_v26 = vmul.f32 %v1029_v21, %v708_v15  ;;  %v3517_v27 = vpop.f32.mrb[10].mxu1 }
 0x359   : > { %v1048_v29 = vadd.f32 %v1045_v20, %v974_v17  ;;  %v1032_v31 = vpop.f32.mrb[11].mxu1 }
 0x35a   : > { %v1046_v33 = vadd.f32 %v1043_v26, %v972_v23  ;;  %v1044_v34 = vmul.f32 %v1032_v31, %v709_v22 }
 0x35b   : > { %v1116_v36 = vmul.f32 %v1048_v29, %v4271_v25  ;;  %v1122_v37 = vmul.f32 %v1048_v29, %v4273_v28  ;;  %v1119_v43 = vmul.f32 %v1048_v29, %v4275_v30  ;;  %v1125_v55 = vmul.f32 %v1048_v29, %v4277_v35 }
 0x35c   : > { %v1117_v40 = vmul.f32 %v1046_v33, %v4275_v30  ;;  %v1047_v41 = vadd.f32 %v1044_v34, %v973_v32  ;;  %v1114_v42 = vmul.f32 %v1046_v33, %v4271_v25  ;;  %v1120_v44 = vmul.f32 %v1046_v33, %v4273_v28 }
 0x35d   : > { %v1123_v45 = vmul.f32 %v1046_v33, %v4277_v35 }
 0x35e   : > { %v3524_v46 = vpop.f32.mrb[8].mxu0  ;;  %v1115_v47 = vmul.f32 %v1047_v41, %v4271_v25  ;;  %v1127_v48 = vpack.c.bf16 %v1117_v40, %v1116_v36  ;;  %v1118_v49 = vmul.f32 %v1047_v41, %v4275_v30  ;;  %v1121_v50 = vmul.f32 %v1047_v41, %v4273_v28 }
 0x35f   : > { %v1110_v51 = vmul.f32 %v3524_v46, %v710_v12  ;;  %v1094_v52 = vpop.f32.mrb[9].mxu0  ;;  %v1130_v53 = vpack.c.bf16 %v1123_v45, %v1122_v37  ;;  %v1124_v54 = vmul.f32 %v1047_v41, %v4277_v35  ;;  %v4315_v12 = vld [vmem:[%s4306_s29 + $0x10] sm:$0xff] }
 0x360   : > { %v1108_v56 = vmul.f32 %v1094_v52, %v708_v15  ;;  %v3525_v57 = vpop.f32.mrb[10].mxu0  ;;  %v1126_v58 = vpack.c.bf16 %v1115_v47, %v1114_v42  ;;  %v1128_v59 = vpack.c.bf16 %v1119_v43, %v1118_v49  ;;  %v1129_v60 = vpack.c.bf16 %v1121_v50, %v1120_v44 }
 0x361   : > { %v1113_v61 = vadd.f32 %v1110_v51, %v1051_v38  ;;  %v1097_v62 = vpop.f32.mrb[11].mxu0  ;;  %v1131_v63 = vpack.c.bf16 %v1125_v55, %v1124_v54 }
 0x362   : > { %v1111_v1 = vadd.f32 %v1108_v56, %v1049_v39  ;;  %v1109_v2 = vmul.f32 %v1097_v62, %v709_v22  ;;  %3530 = vmatprep.mubr.msk.bf16.mxu1 %vm740_vm1, %v1126_v58 }
 0x363   : > { %v1133_v6 = vpack.c.bf16 %v1113_v61, %v1113_v61 }
 0x364   : > { %v1112_v4 = vadd.f32 %v1109_v2, %v1050_v0 }
 0x365   : > { %v1156_v8 = vsel %vm740_vm1, %v1133_v6, 0 }
 0x366   : > { %v1132_v5 = vpack.c.bf16 %v1112_v4, %v1111_v1 }
 0x368   : > { %3710 = vmatprep.subr.msk.bf16.mxu1 %vm740_vm1, %v1132_v5  ;;  %v1153_v7 = vsel %vm740_vm1, %v1132_v5, 0 }
 0x369   : > { %3527 = vmatpush3.bf16.xpose.msra.mxu1 %v1153_v7 }
 0x36a   : > { %3711 = vmatprep.subr.msk.bf16.mxu1 %vm740_vm1, %v1133_v6 }
 0x371   : > { %3529 = vmatpush3.bf16.xpose.msra.mxu1 %v1156_v8 }
 0x378   : > { %3531 = vmatmul.mubr.msk.bf16.vlgmr.msra.gmra.mrb[12].mxu1 %vm740_vm1, %v1127_v48 }
 0x379   : > { %3534 = vmatprep.mubr.msk.bf16.mxu1 %vm740_vm1, %v1128_v59 }
 0x380   : > { %3535 = vmatmul.mubr.msk.bf16.gmra.mrb[16].mxu1 %vm740_vm1, %v1129_v60 }
 0x381   : > { %3538 = vmatprep.mubr.msk.bf16.mxu1 %vm740_vm1, %v1130_v53 }
 0x388   : > { %3539 = vmatmul.mubr.msk.bf16.gmra.mrb[20].mxu1 %vm740_vm1, %v1131_v63 }
 0x44b   : > { %v3532_v9 = vpop.f32.mrb[12].mxu1 }
 0x44c   : > { %v1192_v13 = vpop.f32.mrb[13].mxu1  ;;  %v1201_v19 = vadd.f32 %v3532_v9, %v4315_v12 }
 0x44d   : > { %v1193_v15 = vadd.f32 %v1192_v13, %v4309_v3  ;;  %v3533_v16 = vpop.f32.mrb[14].mxu1 }
 0x44e   : > { %v1195_v17 = vpop.f32.mrb[15].mxu1  ;;  %v1204_v22 = vadd.f32 %v3533_v16, %v4309_v3  ;;  %v1246_v26 = vsel %vm1239_vm13, %v1201_v19, -inf }
 0x44f   : > { %v1196_v20 = vadd.f32 %v1195_v17, %v4312_v10  ;;  %v1240_v21 = vsel %vm1239_vm13, %v1193_v15, -inf }
 0x450   : > { %1241 = vmax.xlane.f32.xlu1 %v1240_v21  ;;  %v1249_v32 = vsel %vm1239_vm13, %v1204_v22, -inf }
 0x451   : > { %v1243_v23 = vsel %vm1239_vm13, %v1196_v20, -inf }
 0x452   : > { %1244 = vmax.xlane.f32.xlu0 %v1243_v23 }
 0x453   : > { %v3536_v24 = vpop.f32.mrb[16].mxu1 }
 0x454   : > { %v1208_v27 = vpop.f32.mrb[17].mxu1  ;;  %1247 = vmax.xlane.f32.xlu1 %v1246_v26  ;;  %v1217_v34 = vadd.f32 %v3536_v24, %v4309_v3 }
 0x455   : > { %v1209_v29 = vadd.f32 %v1208_v27, %v4312_v10  ;;  %v3537_v31 = vpop.f32.mrb[18].mxu1 }
 0x456   : > { %v1211_v33 = vpop.f32.mrb[19].mxu1  ;;  %1250 = vmax.xlane.f32.xlu0 %v1249_v32  ;;  %v1220_v38 = vadd.f32 %v3537_v31, %v4312_v10  ;;  %v1258_v41 = vsel %vm1239_vm13, %v1217_v34, -inf }
 0x457   : > { %v1212_v36 = vadd.f32 %v1211_v33, %v4315_v12  ;;  %v1252_v37 = vsel %vm1239_vm13, %v1209_v29, -inf }
 0x458   : > { %1253 = vmax.xlane.f32.xlu1 %v1252_v37  ;;  %v1261_v45 = vsel %vm1239_vm13, %v1220_v38, -inf }
 0x459   : > { %v1255_v39 = vsel %vm1239_vm13, %v1212_v36, -inf }
 0x45a   : > { %1256 = vmax.xlane.f32.xlu0 %v1255_v39 }
 0x45b   : > { %v3540_v40 = vpop.f32.mrb[20].mxu1 }
 0x45c   : > { %v1224_v42 = vpop.f32.mrb[21].mxu1  ;;  %1259 = vmax.xlane.f32.xlu1 %v1258_v41  ;;  %v4335_v47 = vadd.f32 %v3540_v40, %v4312_v10 }
 0x45d   : > { %v1225_v43 = vadd.f32 %v1224_v42, %v4315_v12  ;;  %v3541_v44 = vpop.f32.mrb[22].mxu1 }
 0x45e   : > { %v1227_v46 = vpop.f32.mrb[23].mxu1  ;;  %1262 = vmax.xlane.f32.xlu0 %v1261_v45  ;;  %v4340_v50 = vadd.f32 %v3541_v44, %v4315_v12  ;;  %v1270_v52 = vsel %vm1239_vm13, %v4335_v47, -inf }
 0x45f   : > { %v1228_v48 = vadd.f32 %v1227_v46, %v4309_v3  ;;  %v1264_v49 = vsel %vm1239_vm13, %v1225_v43, -inf }
 0x460   : > { %1265 = vmax.xlane.f32.xlu1 %v1264_v49  ;;  %v1273_v53 = vsel %vm1239_vm13, %v4340_v50, -inf }
 0x461   : > { %v1267_v51 = vsel %vm1239_vm13, %v1228_v48, -inf }
 0x462   : > { %1268 = vmax.xlane.f32.xlu0 %v1267_v51 }
 0x464   : > { %1271 = vmax.xlane.f32.xlu1 %v1270_v52 }
 0x466   : > { %1274 = vmax.xlane.f32.xlu0 %v1273_v53 }
 0x4dd   : > { %v1242_v54 = vpop.xlane.xlu1 %1241 }
 0x4de   : > { %v1276_v55 = vsub.f32 %v1193_v15, %v1242_v54 }
 0x4df   : > { %v1245_v56 = vpop.xlane.xlu0 %1244 }
 0x4e0   : > { %v1288_v57 = vmul.f32 1.442695, %v1276_v55  ;;  %v1277_v58 = vsub.f32 %v1196_v20, %v1245_v56 }
 0x4e1   : > { %v1248_v59 = vpop.xlane.xlu1 %1247 }
 0x4e2   : > { %3806 = vpow2.f32 %v1288_v57  ;;  %v1290_v60 = vmul.f32 1.442695, %v1277_v58  ;;  %v1278_v61 = vsub.f32 %v1201_v19, %v1248_v59 }
 0x4e3   : > { %v1251_v62 = vpop.xlane.xlu0 %1250 }
 0x4e4   : > { %3808 = vpow2.f32 %v1290_v60  ;;  %v1292_v63 = vmul.f32 1.442695, %v1278_v61  ;;  %v1279_v0 = vsub.f32 %v1204_v22, %v1251_v62 }
 0x4e5   : > { %v1254_v1 = vpop.xlane.xlu1 %1253 }
 0x4e6   : > { %3810 = vpow2.f32 %v1292_v63  ;;  %v1294_v2 = vmul.f32 1.442695, %v1279_v0  ;;  %v1280_v4 = vsub.f32 %v1209_v29, %v1254_v1 }
 0x4e7   : > { %v1257_v5 = vpop.xlane.xlu0 %1256 }
 0x4e8   : > { %3812 = vpow2.f32 %v1294_v2  ;;  %v1296_v6 = vmul.f32 1.442695, %v1280_v4  ;;  %v1281_v7 = vsub.f32 %v1212_v36, %v1257_v5 }
 0x4e9   : > { %v1260_v8 = vpop.xlane.xlu1 %1259 }
 0x4ea   : > { %3814 = vpow2.f32 %v1296_v6  ;;  %v1298_v9 = vmul.f32 1.442695, %v1281_v7  ;;  %v1282_v13 = vsub.f32 %v1217_v34, %v1260_v8 }
 0x4eb   : > { %v1263_v15 = vpop.xlane.xlu0 %1262 }
 0x4ec   : > { %v4347_v16 = vpop.eup %3806  ;;  %3816 = vpow2.f32 %v1298_v9  ;;  %v1300_v17 = vmul.f32 1.442695, %v1282_v13  ;;  %v1283_v19 = vsub.f32 %v1220_v38, %v1263_v15 }
 0x4ed   : > { %v1266_v20 = vpop.xlane.xlu1 %1265  ;;  %v1312_v21 = vsel %vm1239_vm13, %v4347_v16, 0.0 }
 0x4ee   : > { %v4351_v22 = vpop.eup %3808  ;;  %3818 = vpow2.f32 %v1300_v17  ;;  %v1302_v23 = vmul.f32 1.442695, %v1283_v19  ;;  %v1284_v24 = vsub.f32 %v1225_v43, %v1266_v20  ;;  %1313 = vadd.xlane.f32.xlu1 %v1312_v21 }
 0x4ef   : > { %v1269_v26 = vpop.xlane.xlu0 %1268  ;;  %v1315_v27 = vsel %vm1239_vm13, %v4351_v22, 0.0 }
 0x4f0   : > { %v4355_v29 = vpop.eup %3810  ;;  %3820 = vpow2.f32 %v1302_v23  ;;  %v1304_v31 = vmul.f32 1.442695, %v1284_v24  ;;  %v1285_v32 = vsub.f32 %v1228_v48, %v1269_v26  ;;  %1316 = vadd.xlane.f32.xlu0 %v1315_v27 }
 0x4f1   : > { %v1272_v33 = vpop.xlane.xlu1 %1271  ;;  %v1318_v34 = vsel %vm1239_vm13, %v4355_v29, 0.0 }
 0x4f2   : > { %v4359_v36 = vpop.eup %3812  ;;  %3822 = vpow2.f32 %v1304_v31  ;;  %v1306_v37 = vmul.f32 1.442695, %v1285_v32  ;;  %v1286_v38 = vsub.f32 %v4335_v47, %v1272_v33  ;;  %1319 = vadd.xlane.f32.xlu1 %v1318_v34 }
 0x4f3   : > { %v1275_v39 = vpop.xlane.xlu0 %1274  ;;  %v1321_v40 = vsel %vm1239_vm13, %v4359_v36, 0.0 }
 0x4f4   : > { %v4364_v41 = vpop.eup %3814  ;;  %3824 = vpow2.f32 %v1306_v37  ;;  %v1308_v42 = vmul.f32 1.442695, %v1286_v38  ;;  %v1287_v43 = vsub.f32 %v4340_v50, %v1275_v39  ;;  %1322 = vadd.xlane.f32.xlu0 %v1321_v40 }
 0x4f5   : > { %v1324_v44 = vsel %vm1239_vm13, %v4364_v41, 0.0 }
 0x4f6   : > { %v4369_v45 = vpop.eup %3816  ;;  %3826 = vpow2.f32 %v1308_v42  ;;  %v1310_v46 = vmul.f32 1.442695, %v1287_v43  ;;  %1325 = vadd.xlane.f32.xlu1 %v1324_v44 }
 0x4f7   : > { %v1327_v47 = vsel %vm1239_vm13, %v4369_v45, 0.0 }
 0x4f8   : > { %v4373_v48 = vpop.eup %3818  ;;  %3828 = vpow2.f32 %v1310_v46  ;;  %1328 = vadd.xlane.f32.xlu0 %v1327_v47 }
 0x4f9   : > { %v1330_v49 = vsel %vm1239_vm13, %v4373_v48, 0.0 }
 0x4fa   : > { %v3821_v50 = vpop.eup %3820  ;;  %1331 = vadd.xlane.f32.xlu1 %v1330_v49  ;;  %v3773_v49 = vld [vmem:[%s4810_s11 + $0x8] sm:$0xff]  }
 0x4fb   : > { %v1333_v51 = vsel %vm1239_vm13, %v3821_v50, 0.0 }
 0x4fc   : > { %v4378_v52 = vpop.eup %3822  ;;  %1334 = vadd.xlane.f32.xlu0 %v1333_v51 }
 0x4fd   : > { %v1336_v53 = vsel %vm1239_vm13, %v4378_v52, 0.0 }
 0x4fe   : > { %v3825_v54 = vpop.eup %3824  ;;  %1337 = vadd.xlane.f32.xlu1 %v1336_v53 }
 0x4ff   : > { %v1339_v55 = vsel %vm1239_vm13, %v3825_v54, 0.0 }
 0x500   : > { %v4383_v56 = vpop.eup %3826  ;;  %1340 = vadd.xlane.f32.xlu0 %v1339_v55 }
 0x501   : > { %v1342_v57 = vsel %vm1239_vm13, %v4383_v56, 0.0 }
 0x502   : > { %v3829_v58 = vpop.eup %3828  ;;  %1343 = vadd.xlane.f32.xlu1 %v1342_v57 }
 0x503   : > { %v1345_v59 = vsel %vm1239_vm13, %v3829_v58, 0.0 }
 0x504   : > { %1346 = vadd.xlane.f32.xlu0 %v1345_v59 }
 0x57b   : > { %v1314_v60 = vpop.xlane.xlu1 %1313 }
 0x57c   : > { %3830 = vrcp.f32 %v1314_v60 }
 0x57d   : > { %v1317_v61 = vpop.xlane.xlu0 %1316 }
 0x57e   : > { %3832 = vrcp.f32 %v1317_v61 }
 0x57f   : > { %v1320_v62 = vpop.xlane.xlu1 %1319 }
 0x580   : > { %3834 = vrcp.f32 %v1320_v62 }
 0x581   : > { %v1323_v63 = vpop.xlane.xlu0 %1322 }
 0x582   : > { %3836 = vrcp.f32 %v1323_v63 }
 0x583   : > { %v1326_v0 = vpop.xlane.xlu1 %1325 }
 0x584   : > { %3838 = vrcp.f32 %v1326_v0 }
 0x585   : > { %v1329_v1 = vpop.xlane.xlu0 %1328 }
 0x586   : > { %v3831_v2 = vpop.eup %3830  ;;  %3840 = vrcp.f32 %v1329_v1 }
 0x587   : > { %v1332_v4 = vpop.xlane.xlu1 %1331  ;;  %v1360_v7 = vmul.f32 %v3831_v2, %v4347_v16 }
 0x588   : > { %v3833_v5 = vpop.eup %3832  ;;  %3842 = vrcp.f32 %v1332_v4 }
 0x589   : > { %v1335_v6 = vpop.xlane.xlu0 %1334  ;;  %v1361_v8 = vmul.f32 %v3833_v5, %v4351_v22 }
 0x58a   : > { %v3835_v9 = vpop.eup %3834  ;;  %3844 = vrcp.f32 %v1335_v6 }
 0x58b   : > { %v1338_v13 = vpop.xlane.xlu1 %1337  ;;  %v1372_v15 = vpack.c.bf16 %v1361_v8, %v1360_v7  ;;  %v1362_v19 = vmul.f32 %v3835_v9, %v4355_v29 }
 0x58c   : > { %v3837_v17 = vpop.eup %3836  ;;  %3846 = vrcp.f32 %v1338_v13 }
 0x58d   : > { %v1363_v20 = vmul.f32 %v3837_v17, %v4359_v36  ;;  %v1341_v21 = vpop.xlane.xlu0 %1340  ;;  %3546 = vmatprep.mubr.msk.bf16.mxu0 %vm1239_vm13, %v1372_v15 }
 0x58e   : > { %v3839_v23 = vpop.eup %3838  ;;  %3848 = vrcp.f32 %v1341_v21 }
 0x58f   : > { %v1344_v24 = vpop.xlane.xlu1 %1343  ;;  %v1373_v26 = vpack.c.bf16 %v1363_v20, %v1362_v19  ;;  %v1364_v27 = vmul.f32 %v3839_v23, %v4364_v41 }
 0x590   : > { %v3841_v16 = vpop.eup %3840  ;;  %3850 = vrcp.f32 %v1344_v24 }
 0x591   : > { %v1347_v22 = vpop.xlane.xlu0 %1346  ;;  %3547 = vmatmul.mubr.msk.bf16.vlgmr.msra.gmra.mrb[12].mxu0 %vm1239_vm13, %v1373_v26  ;;  %v1365_v31 = vmul.f32 %v3841_v16, %v4369_v45 }
 0x592   : > { %v3843_v32 = vpop.eup %3842  ;;  %3852 = vrcp.f32 %v1347_v22 }
 0x593   : > { %v1374_v29 = vpack.c.bf16 %v1365_v31, %v1364_v27  ;;  %v1366_v34 = vmul.f32 %v3843_v32, %v4373_v48  ;;  %v3772_v48 = vld [vmem:[%s4810_s11] sm:$0xff]  }
 0x594   : > { %v3845_v33 = vpop.eup %3844  ;;  %3558 = vmatprep.subr.bf16.mxu0 %v3772_v48 }
 0x595   : > { %3550 = vmatprep.mubr.msk.bf16.mxu0 %vm1239_vm13, %v1374_v29  ;;  %v1367_v36 = vmul.f32 %v3845_v33, %v3821_v50  ;;  %3559 = vmatpush3.bf16.msra.mxu0 %v3772_v48 }
 0x596   : > { %v3847_v37 = vpop.eup %3846  ;;  %3560 = vmatprep.subr.bf16.mxu0 %v3773_v49 }
 0x597   : > { %v1375_v38 = vpack.c.bf16 %v1367_v36, %v1366_v34  ;;  %v1368_v40 = vmul.f32 %v3847_v37, %v4378_v52 }
 0x598   : > { %v3849_v39 = vpop.eup %3848 }
 0x599   : > { %3551 = vmatmul.mubr.msk.bf16.gmra.mrb[16].mxu0 %vm1239_vm13, %v1375_v38  ;;  %v1369_v42 = vmul.f32 %v3849_v39, %v3825_v54 }
 0x59a   : > { %v3851_v41 = vpop.eup %3850  ;;  %3561 = vmatpush3.bf16.msra.mxu0 %v3773_v49 }
 0x59b   : > { %v1376_v43 = vpack.c.bf16 %v1369_v42, %v1368_v40  ;;  %v1370_v45 = vmul.f32 %v3851_v41, %v4383_v56  ;;  %v3776_v41 = vld [vmem:[%s4813_s14] sm:$0xff]  }
 0x59c   : > { %v3853_v44 = vpop.eup %3852  ;;  %3574 = vmatprep.subr.bf16.mxu0 %v3776_v41 }
 0x59d   : > { %3554 = vmatprep.mubr.msk.bf16.mxu0 %vm1239_vm13, %v1376_v43  ;;  %v1371_v46 = vmul.f32 %v3853_v44, %v3829_v58  ;;  %v3775_v43 = vld [vmem:[%s4812_s13 + $0x8] sm:$0xff]  }
 0x59e   : > { %v3777_v44 = vld [vmem:[%s4813_s14 + $0x8] sm:$0xff]  }
 0x59f   : > { %v1377_v47 = vpack.c.bf16 %v1371_v46, %v1370_v45 }
 0x5a1   : > { %3555 = vmatmul.mubr.msk.bf16.gmra.mrb[20].mxu0 %vm1239_vm13, %v1377_v47 }
 0x664   : > { %v3548_v50 = vpop.f32.mrb[12].mxu0 }
 0x665   : > { %v1436_v51 = vpop.f32.mrb[13].mxu0  ;;  %v1485_v2 = vmul.f32 %v3548_v50, %v4271_v25 }
 0x666   : > { %v1483_v52 = vmul.f32 %v1436_v51, %v4271_v25  ;;  %v3549_v53 = vpop.f32.mrb[14].mxu0 }
 0x667   : > { %v1489_v54 = vmul.f32 %v3549_v53, %v4275_v30  ;;  %v1439_v55 = vpop.f32.mrb[15].mxu0 }
 0x668   : > { %v1484_v60 = vmul.f32 %v1439_v55, %v4271_v25 }
 0x669   : > { %v1492_v56 = vadd.f32 %v1489_v54, %v1483_v52 }
 0x66c   : > { %v3552_v57 = vpop.f32.mrb[16].mxu0 }
 0x66d   : > { %v1495_v58 = vmul.f32 %v3552_v57, %v4273_v28  ;;  %v1452_v59 = vpop.f32.mrb[17].mxu0  ;;  %v3248_v57 = vld [vmem:[%s4811_s12] ss:$0 sm:$0xff] }
 0x66e   : > { %v1490_v61 = vmul.f32 %v1452_v59, %v4275_v30  ;;  %v3553_v62 = vpop.f32.mrb[18].mxu0 }
 0x66f   : > { %v1498_v63 = vadd.f32 %v1495_v58, %v1492_v56  ;;  %v1496_v0 = vmul.f32 %v3553_v62, %v4273_v28  ;;  %v1455_v1 = vpop.f32.mrb[19].mxu0 }
 0x670   : > { %v1493_v4 = vadd.f32 %v1490_v61, %v1484_v60  ;;  %v1491_v5 = vmul.f32 %v1455_v1, %v4275_v30 }
 0x672   : > { %v1499_v6 = vadd.f32 %v1496_v0, %v1493_v4  ;;  %v1494_v7 = vadd.f32 %v1491_v5, %v1485_v2  ;;  %v3778_v2 = vld [vmem:[%s4814_s15] sm:$0xff]   ;;  %v3779_v4 = vld [vmem:[%s4814_s15 + $0x8] sm:$0xff]   ;;  %v3780_v5 = vld [vmem:[%s4814_s15 + $0x10] sm:$0xff]  }
 0x674   : > { %v3556_v8 = vpop.f32.mrb[20].mxu0 }
 0x675   : > { %v1502_v9 = vmul.f32 %v3556_v8, %v4277_v35  ;;  %v1468_v13 = vpop.f32.mrb[21].mxu0 }
 0x676   : > { %v1497_v15 = vmul.f32 %v1468_v13, %v4273_v28  ;;  %v3557_v17 = vpop.f32.mrb[22].mxu0 }
 0x677   : > { %v1505_v19 = vadd.f32 %v1502_v9, %v1499_v6  ;;  %v1503_v20 = vmul.f32 %v3557_v17, %v4277_v35  ;;  %v1471_v21 = vpop.f32.mrb[23].mxu0  ;;  %v3781_v6 = vld [vmem:[%s4814_s15 + $0x18] sm:$0xff]  }
 0x678   : > { %v1500_v23 = vadd.f32 %v1497_v15, %v1494_v7  ;;  %v1501_v24 = vmul.f32 %v1471_v21, %v4277_v35 }
 0x67a   : > { %v1506_v26 = vadd.f32 %v1503_v20, %v1500_v23  ;;  %v1504_v16 = vadd.f32 %v1501_v24, %v1498_v63 }
 0x67c   : > { %v1512_v22 = vpack.c.bf16 %v1506_v26, %v1506_v26  ;;  %v1511_v27 = vpack.c.bf16 %v1505_v19, %v1504_v16 }
 0x67e   : > { %3562 = vmatprep.mubr.msk.bf16.mxu0 %vm740_vm1, %v1511_v27 }
 0x67f   : > { %3563 = vmatmul.mubr.msk.bf16.vlgmr.msra.gmra.mrb[24].mxu0 %vm740_vm1, %v1512_v22 }
 0x680   : > { %3575 = vmatpush3.bf16.msra.mxu0 %v3776_v41 }
 0x681   : > { %3576 = vmatprep.subr.bf16.mxu0 %v3777_v44 }
 0x684   : > { %3577 = vmatpush3.bf16.msra.mxu0 %v3777_v44 }
 0x752   : > { %v3564_v31 = vpop.f32.mrb[24].mxu0 }
 0x753   : > { %v1565_v32 = vpop.f32.mrb[25].mxu0  ;;  %v4424_v29 = vadd.f32 %v3564_v31, %v4193_v11 }
 0x754   : > { %v4427_v33 = vadd.f32 %v1565_v32, %v4195_v14  ;;  %v3565_v34 = vpop.f32.mrb[26].mxu0 }
 0x755   : > { %v1568_v36 = vpop.f32.mrb[27].mxu0  ;;  %v1585_v11 = vmul.f32 %v4424_v29, %v4424_v29 }
 0x756   : > { %v4430_v37 = vadd.f32 %v1568_v36, %v4199_v18  ;;  %v1583_v38 = vmul.f32 %v4427_v33, %v4427_v33  ;;  %v3774_v18 = vld [vmem:[%s4812_s13] sm:$0xff]  }
 0x757   : > { %v1592_v42 = vsel %vm740_vm1, %v1585_v11, 0.0  ;;  %3566 = vmatprep.subr.bf16.mxu1 %v3774_v18 }
 0x758   : > { %v1586_v39 = vsel %vm740_vm1, %v1583_v38, 0.0  ;;  %v1584_v40 = vmul.f32 %v4430_v37, %v4430_v37  ;;  %3567 = vmatpush3.bf16.msra.mxu1 %v3774_v18 }
 0x759   : > { %1587 = vadd.xlane.f32.xlu1 %v1586_v39  ;;  %3568 = vmatprep.subr.bf16.mxu1 %v3775_v43 }
 0x75a   : > { %v1589_v14 = vsel %vm740_vm1, %v1584_v40, 0.0 }
 0x75b   : > { %1590 = vadd.xlane.f32.xlu0 %v1589_v14 }
 0x75c   : > { %3569 = vmatpush3.bf16.msra.mxu1 %v3775_v43 }
 0x75d   : > { %1593 = vadd.xlane.f32.xlu1 %v1592_v42  ;;  %3582 = vmatprep.subr.bf16.mxu1 %v3778_v2 }
 0x7e6   : > { %v1588_v45 = vpop.xlane.xlu1 %1587 }
 0x7e7   : > { %v1595_v46 = vmul.f32 0.03125, %v1588_v45 }
 0x7e8   : > { %v1591_v47 = vpop.xlane.xlu0 %1590 }
 0x7e9   : > { %v1598_v48 = vadd.f32 1e-06, %v1595_v46  ;;  %v1596_v49 = vmul.f32 0.03125, %v1591_v47 }
 0x7ea   : > { %v1594_v50 = vpop.xlane.xlu1 %1593 }
 0x7eb   : > { %3854 = vrsqrt.f32 %v1598_v48  ;;  %v1599_v51 = vadd.f32 1e-06, %v1596_v49  ;;  %v1597_v52 = vmul.f32 0.03125, %v1594_v50 }
 0x7ed   : > { %3856 = vrsqrt.f32 %v1599_v51  ;;  %v1600_v53 = vadd.f32 1e-06, %v1597_v52 }
 0x7ef   : > { %3858 = vrsqrt.f32 %v1600_v53 }
 0x7f5   : > { %v3855_v54 = vpop.eup %3854 }
 0x7f6   : > { %v1604_v55 = vmul.f32 %v3855_v54, %v4427_v33 }
 0x7f7   : > { %v3857_v56 = vpop.eup %3856 }
 0x7f8   : > { %v1605_v58 = vmul.f32 %v3857_v56, %v4430_v37  ;;  %v1613_v61 = vmul.f32 %v3248_v57, %v1604_v55  ;;  %v3783_v55 = vld [vmem:[%s4809_s10 + $0x10] sm:$0xff]   ;;  %v3784_v56 = vld [vmem:[%s4807_s8 + $0x18] sm:$0xff]  }
 0x7f9   : > { %v3859_v59 = vpop.eup %3858 }
 0x7fa   : > { %v1606_v60 = vmul.f32 %v3859_v59, %v4424_v29  ;;  %v1614_v62 = vmul.f32 %v3248_v57, %v1605_v58  ;;  %v3786_v58 = vld [vmem:[%s4808_s9 + $0x10] sm:$0xff]   ;;  %v3950_v59 = vld [vmem:[%s4805_s6] sm:$0xff]  }
 0x7fc   : > { %v1615_v63 = vmul.f32 %v3248_v57, %v1606_v60  ;;  %v1620_v0 = vpack.c.bf16 %v1614_v62, %v1613_v61  ;;  %v3785_v57 = vld [vmem:[%s4809_s10 + $0x18] sm:$0xff]  }
 0x7fe   : > { %v1621_v1 = vpack.c.bf16 %v1615_v63, %v1615_v63  ;;  %3570 = vmatprep.mubr.msk.bf16.mxu1 %vm740_vm1, %v1620_v0  ;;  %3578 = vmatprep.mubr.msk.bf16.mxu0 %vm740_vm1, %v1620_v0 }
 0x800   : > { %3571 = vmatmul.mubr.msk.bf16.vlgmr.msra.gmra.mrb[24].mxu1 %vm740_vm1, %v1621_v1  ;;  %3579 = vmatmul.mubr.msk.bf16.vlgmr.msra.gmra.mrb[28].mxu0 %vm740_vm1, %v1621_v1 }
 0x801   : > { %3583 = vmatpush3.bf16.msra.mxu1 %v3778_v2 }
 0x802   : > { %3584 = vmatprep.subr.bf16.mxu1 %v3779_v4 }
 0x805   : > { %3585 = vmatpush3.bf16.msra.mxu1 %v3779_v4 }
 0x806   : > { %3586 = vmatprep.subr.bf16.mxu1 %v3780_v5 }
 0x809   : > { %3587 = vmatpush3.bf16.msra.mxu1 %v3780_v5 }
 0x80a   : > { %3588 = vmatprep.subr.bf16.mxu1 %v3781_v6 }
 0x80d   : > { %3589 = vmatpush3.bf16.msra.mxu1 %v3781_v6 }
 0x80e   : > { %3610 = vmatprep.subr.bf16.mxu1 %v3783_v55 }
 0x8d3   : > { %v3572_v7 = vpop.f32.mrb[24].mxu1  ;;  %v3580_v8 = vpop.f32.mrb[28].mxu0 }
 0x8d4   : > { %v3259_v9 = vmul.f32 -1.442695, %v3572_v7  ;;  %v1674_v13 = vpop.f32.mrb[25].mxu1  ;;  %v1738_v15 = vpop.f32.mrb[29].mxu0 }
 0x8d5   : > { %v3257_v17 = vmul.f32 -1.442695, %v1674_v13  ;;  %v3573_v19 = vpop.f32.mrb[26].mxu1  ;;  %v3581_v20 = vpop.f32.mrb[30].mxu0 }
 0x8d6   : > { %3860 = vpow2.f32 %v3259_v9  ;;  %v1677_v21 = vpop.f32.mrb[27].mxu1  ;;  %v1741_v23 = vpop.f32.mrb[31].mxu0  ;;  %v3267_v9 = vld [vmem:[%s4806_s7 + $0x1] ss:$0 sm:$0xff] }
 0x8d7   : > { %3862 = vpow2.f32 %v3257_v17  ;;  %v3258_v24 = vmul.f32 -1.442695, %v1677_v21 }
 0x8d9   : > { %3864 = vpow2.f32 %v3258_v24 }
 0x8e0   : > { %v3861_v26 = vpop.eup %3860 }
 0x8e1   : > { %v3863_v16 = vpop.eup %3862  ;;  %v1763_v22 = vadd.f32 1.0, %v3861_v26  ;;  %v3787_v26 = vld [vmem:[%s4808_s9 + $0x18] sm:$0xff]  }
 0x8e2   : > { %v1761_v27 = vadd.f32 1.0, %v3863_v16  ;;  %v3951_v16 = vld [vmem:[%s4805_s6 + $0x8] sm:$0xff]  }
 0x8e3   : > { %v3865_v31 = vpop.eup %3864  ;;  %3866 = vrcp.f32 %v1763_v22 }
 0x8e4   : > { %3868 = vrcp.f32 %v1761_v27  ;;  %v1762_v32 = vadd.f32 1.0, %v3865_v31 }
 0x8e6   : > { %3870 = vrcp.f32 %v1762_v32 }
 0x8ed   : > { %v3867_v34 = vpop.eup %3866 }
 0x8ee   : > { %v3869_v36 = vpop.eup %3868  ;;  %v1772_v38 = vmul.f32 %v3867_v34, %v3572_v7 }
 0x8ef   : > { %v1770_v39 = vmul.f32 %v3869_v36, %v1674_v13 }
 0x8f0   : > { %v3871_v40 = vpop.eup %3870  ;;  %v1775_v11 = vmul.f32 %v3580_v8, %v1772_v38 }
 0x8f1   : > { %v1773_v14 = vmul.f32 %v1770_v39, %v1738_v15  ;;  %v1771_v42 = vmul.f32 %v3871_v40, %v1677_v21 }
 0x8f2   : > { %v1785_v43 = vpack.c.bf16 %v1775_v11, %v1775_v11 }
 0x8f3   : > { %v1774_v18 = vmul.f32 %v1771_v42, %v1741_v23 }
 0x8f5   : > { %v1784_v41 = vpack.c.bf16 %v1774_v18, %v1773_v14 }
 0x8f7   : > { %3590 = vmatprep.mubr.msk.bf16.mxu1 %vm1810_vm14, %v1784_v41 }
 0x8f8   : > { %3591 = vmatmul.mubr.msk.bf16.vlgmr.msra.gmra.mrb[28].mxu1 %vm1810_vm14, %v1785_v43 }
 0x8f9   : > { %3611 = vmatpush3.bf16.msra.mxu1 %v3783_v55 }
 0x8fa   : > { %3612 = vmatprep.subr.bf16.mxu1 %v3785_v57 }
 0x8fd   : > { %3613 = vmatpush3.bf16.msra.mxu1 %v3785_v57 }
 0x8fe   : > { %3626 = vmatprep.subr.bf16.mxu1 %v3950_v59 }
 0x9cb   : > { %v3592_v44 = vpop.f32.mrb[28].mxu1 }
 0x9cc   : > { %v1851_v45 = vpop.f32.mrb[29].mxu1  ;;  %v4478_v46 = vadd.f32 %v3592_v44, %v4424_v29 }
 0x9cd   : > { %v4481_v47 = vadd.f32 %v1851_v45, %v4427_v33  ;;  %v3593_v48 = vpop.f32.mrb[30].mxu1 }
 0x9ce   : > { %v1854_v49 = vpop.f32.mrb[31].mxu1  ;;  %v1872_v29 = vmul.f32 %v4478_v46, %v4478_v46 }
 0x9cf   : > { %v4484_v50 = vadd.f32 %v1854_v49, %v4430_v37  ;;  %v1870_v51 = vmul.f32 %v4481_v47, %v4481_v47  ;;  %v3782_v37 = vld [vmem:[%s4807_s8 + $0x10] sm:$0xff]  }
 0x9d0   : > { %v1879_v54 = vsel %vm740_vm1, %v1872_v29, 0.0  ;;  %3594 = vmatprep.subr.bf16.mxu0 %v3782_v37  ;;  %v3953_v29 = vld [vmem:[%s4804_s5 + $0x10] sm:$0xff] }
 0x9d1   : > { %v1873_v52 = vsel %vm740_vm1, %v1870_v51, 0.0  ;;  %v1871_v53 = vmul.f32 %v4484_v50, %v4484_v50  ;;  %3595 = vmatpush3.bf16.msra.mxu0 %v3782_v37  ;;  %v3954_v37 = vld [vmem:[%s4803_s4] sm:$0xff] }
 0x9d2   : > { %1874 = vadd.xlane.f32.xlu0 %v1873_v52  ;;  %3596 = vmatprep.subr.bf16.mxu0 %v3784_v56  ;;  %v3952_v52 = vld [vmem:[%s4803_s4 + $0x10] sm:$0xff] }
 0x9d3   : > { %v1876_v33 = vsel %vm740_vm1, %v1871_v53, 0.0 }
 0x9d4   : > { %1877 = vadd.xlane.f32.xlu1 %v1876_v33 }
 0x9d5   : > { %3597 = vmatpush3.bf16.msra.mxu0 %v3784_v56  ;;  %v3955_v56 = vld [vmem:[%s4804_s5] sm:$0xff] }
 0x9d6   : > { %1880 = vadd.xlane.f32.xlu0 %v1879_v54  ;;  %3602 = vmatprep.subr.bf16.mxu0 %v3786_v58 }
 0xa5f   : > { %v1875_v60 = vpop.xlane.xlu0 %1874 }
 0xa60   : > { %v1882_v61 = vmul.f32 0.03125, %v1875_v60 }
 0xa61   : > { %v1878_v62 = vpop.xlane.xlu1 %1877 }
 0xa62   : > { %v1885_v63 = vadd.f32 1e-06, %v1882_v61  ;;  %v1883_v0 = vmul.f32 0.03125, %v1878_v62  ;;  %v3956_v61 = vld [vmem:[%s4803_s4 + $0x8] sm:$0xff] }
 0xa63   : > { %v1881_v1 = vpop.xlane.xlu0 %1880 }
 0xa64   : > { %3872 = vrsqrt.f32 %v1885_v63  ;;  %v1886_v2 = vadd.f32 1e-06, %v1883_v0  ;;  %v1884_v4 = vmul.f32 0.03125, %v1881_v1  ;;  %v3957_v0 = vld [vmem:[%s4804_s5 + $0x8] sm:$0xff] }
 0xa66   : > { %3874 = vrsqrt.f32 %v1886_v2  ;;  %v1887_v5 = vadd.f32 1e-06, %v1884_v4 }
 0xa68   : > { %3876 = vrsqrt.f32 %v1887_v5 }
 0xa6e   : > { %v3873_v6 = vpop.eup %3872 }
 0xa6f   : > { %v1891_v7 = vmul.f32 %v3873_v6, %v4481_v47 }
 0xa70   : > { %v3875_v8 = vpop.eup %3874 }
 0xa71   : > { %v1892_v13 = vmul.f32 %v3875_v8, %v4484_v50  ;;  %v1900_v19 = vmul.f32 %v3267_v9, %v1891_v7 }
 0xa72   : > { %v3877_v15 = vpop.eup %3876 }
 0xa73   : > { %v1893_v17 = vmul.f32 %v3877_v15, %v4478_v46  ;;  %v1901_v20 = vmul.f32 %v3267_v9, %v1892_v13 }
 0xa75   : > { %v1908_v21 = vpack.c.bf16 %v1901_v20, %v1900_v19  ;;  %v1902_v23 = vmul.f32 %v3267_v9, %v1893_v17 }
 0xa77   : > { %3598 = vmatprep.mubr.msk.bf16.mxu0 %vm740_vm1, %v1908_v21  ;;  %3614 = vmatprep.mubr.msk.bf16.mxu1 %vm740_vm1, %v1908_v21  ;;  %v1909_v24 = vpack.c.bf16 %v1902_v23, %v1902_v23 }
 0xa79   : > { %3599 = vmatmul.mubr.msk.bf16.vlgmr.msra.gmra.mrb[32].mxu0 %vm740_vm1, %v1909_v24  ;;  %3615 = vmatmul.mubr.msk.bf16.vlgmr.msra.gmra.mrb[32].mxu1 %vm740_vm1, %v1909_v24 }
 0xa7a   : > { %3603 = vmatpush3.bf16.msra.mxu0 %v3786_v58  ;;  %3606 = vmatprep.mubr.msk.bf16.mxu0 %vm740_vm1, %v1908_v21 }
 0xa7b   : > { %3604 = vmatprep.subr.bf16.mxu0 %v3787_v26  ;;  %3627 = vmatpush3.bf16.msra.mxu1 %v3950_v59 }
 0xa7c   : > { %3628 = vmatprep.subr.bf16.mxu1 %v3951_v16 }
 0xa7e   : > { %3605 = vmatpush3.bf16.msra.mxu0 %v3787_v26 }
 0xa7f   : > { %3618 = vmatprep.subr.bf16.mxu0 %v3950_v59  ;;  %3629 = vmatpush3.bf16.msra.mxu1 %v3951_v16 }
 0xa81   : > { %3607 = vmatmul.mubr.msk.bf16.vlgmr.msra.gmra.mrb[36].mxu0 %vm740_vm1, %v1909_v24 }
 0xa82   : > { %3619 = vmatpush3.bf16.msra.mxu0 %v3950_v59 }
 0xa83   : > { %3620 = vmatprep.subr.bf16.mxu0 %v3951_v16 }
 0xa86   : > { %3621 = vmatpush3.bf16.msra.mxu0 %v3951_v16 }
 0xb4c   : > { %v3600_v22 = vpop.f32.mrb[32].mxu0  ;;  %v3616_v27 = vpop.f32.mrb[32].mxu1 }
 0xb4d   : > { %v1962_v31 = vpop.f32.mrb[33].mxu0  ;;  %v2092_v32 = vpop.f32.mrb[33].mxu1  ;;  %v2110_v14 = vpack.c.bf16 %v3600_v22, %v3600_v22  ;;  %v2500_v48 = vpack.c.bf16 %v3616_v27, %v3616_v27  ;;  %v2108_v53 = vmul.f32 %v3952_v52, %v3600_v22 }
 0xb4e   : > { %v3601_v34 = vpop.f32.mrb[34].mxu0  ;;  %v3617_v36 = vpop.f32.mrb[34].mxu1  ;;  %v2106_v55 = vmul.f32 %v3954_v37, %v1962_v31 }
 0xb4f   : > { %v1965_v38 = vpop.f32.mrb[35].mxu0  ;;  %v2095_v39 = vpop.f32.mrb[35].mxu1  ;;  %v2520_v49 = vsel %vm1398_vm2, %v2500_v48, 0 }
 0xb50   : > { %v2109_v40 = vpack.c.bf16 %v1965_v38, %v1962_v31  ;;  %v2499_v11 = vpack.c.bf16 %v2095_v39, %v2092_v32  ;;  %v2107_v62 = vmul.f32 %v3956_v61, %v1965_v38 }
 0xb52   : > { %3622 = vmatprep.mubr.msk.bf16.mxu0 %vm740_vm1, %v2109_v40  ;;  %3650 = vmatprep.subr.bf16.mxu1 %v2499_v11 }
 0xb53   : > { %3623 = vmatmul.mubr.msk.bf16.vlgmr.msra.gmra.mrb[40].mxu0 %vm740_vm1, %v2110_v14 }
 0xb54   : > { %v3608_v42 = vpop.f32.mrb[36].mxu0 }
 0xb55   : > { %v2027_v18 = vpop.f32.mrb[37].mxu0  ;;  %v2175_v45 = vpack.c.bf16 %v3608_v42, %v3608_v42  ;;  %v2173_v5 = vmul.f32 %v3952_v52, %v3608_v42 }
 0xb56   : > { %v3609_v41 = vpop.f32.mrb[38].mxu0  ;;  %v2171_v6 = vmul.f32 %v3954_v37, %v2027_v18 }
 0xb57   : > { %v2030_v43 = vpop.f32.mrb[39].mxu0 }
 0xb58   : > { %v2174_v44 = vpack.c.bf16 %v2030_v43, %v2027_v18  ;;  %v2172_v42 = vmul.f32 %v3956_v61, %v2030_v43  ;;  %v3958_v61 = vld [vmem:[%s4306_s29 + $0x8] sm:$0xff] }
 0xb5a   : > { %3630 = vmatprep.mubr.msk.bf16.mxu1 %vm740_vm1, %v2174_v44 }
 0xb5b   : > { %3631 = vmatmul.mubr.msk.bf16.vlgmr.msra.gmra.mrb[36].mxu1 %vm740_vm1, %v2175_v45 }
 0xb5c   : > { %3651 = vmatpush3.bf16.msra.mxu1 %v2499_v11 }
 0xb5d   : > { %3715 = vmatprep.subr.msk.bf16.mxu1 %vm1398_vm2, %v2500_v48 }
 0xb60   : > { %3653 = vmatpush3.bf16.msra.mxu1 %v2520_v49 }
 0xc26   : > { %v3624_v51 = vpop.f32.mrb[40].mxu0 }
 0xc27   : > { %v2167_v33 = vmul.f32 %v3953_v29, %v3624_v51  ;;  %v2151_v54 = vpop.f32.mrb[41].mxu0 }
 0xc28   : > { %v2165_v57 = vmul.f32 %v3955_v56, %v2151_v54  ;;  %v3625_v58 = vpop.f32.mrb[42].mxu0 }
 0xc29   : > { %v2170_v59 = vadd.f32 %v2167_v33, %v2108_v53  ;;  %v2154_v60 = vpop.f32.mrb[43].mxu0 }
 0xc2a   : > { %v2168_v63 = vadd.f32 %v2165_v57, %v2106_v55  ;;  %v2166_v1 = vmul.f32 %v3957_v0, %v2154_v60 }
 0xc2b   : > { %v2238_v2 = vmul.f32 %v2170_v59, %v4271_v25  ;;  %v2244_v4 = vmul.f32 %v2170_v59, %v4273_v28  ;;  %v2241_v13 = vmul.f32 %v2170_v59, %v4275_v30  ;;  %v2247_v31 = vmul.f32 %v2170_v59, %v4277_v35 }
 0xc2c   : > { %v2239_v7 = vmul.f32 %v2168_v63, %v4275_v30  ;;  %v2169_v8 = vadd.f32 %v2166_v1, %v2107_v62  ;;  %v2236_v9 = vmul.f32 %v2168_v63, %v4271_v25  ;;  %v2242_v15 = vmul.f32 %v2168_v63, %v4273_v28 }
 0xc2d   : > { %v2245_v17 = vmul.f32 %v2168_v63, %v4277_v35 }
 0xc2e   : > { %v3632_v19 = vpop.f32.mrb[36].mxu1  ;;  %v2237_v20 = vmul.f32 %v2169_v8, %v4271_v25  ;;  %v2249_v21 = vpack.c.bf16 %v2239_v7, %v2238_v2  ;;  %v2240_v23 = vmul.f32 %v2169_v8, %v4275_v30  ;;  %v2243_v24 = vmul.f32 %v2169_v8, %v4273_v28  ;;  %v3960_v2 = vld [vmem:[%s4306_s29 + $0x10] sm:$0xff] }
 0xc2f   : > { %v2232_v26 = vmul.f32 %v3953_v29, %v3632_v19  ;;  %v2216_v16 = vpop.f32.mrb[37].mxu1  ;;  %v2252_v22 = vpack.c.bf16 %v2245_v17, %v2244_v4  ;;  %v2246_v27 = vmul.f32 %v2169_v8, %v4277_v35 }
 0xc30   : > { %v2230_v32 = vmul.f32 %v3955_v56, %v2216_v16  ;;  %v3633_v34 = vpop.f32.mrb[38].mxu1  ;;  %v2248_v36 = vpack.c.bf16 %v2237_v20, %v2236_v9  ;;  %v2250_v38 = vpack.c.bf16 %v2241_v13, %v2240_v23  ;;  %v2251_v39 = vpack.c.bf16 %v2243_v24, %v2242_v15 }
 0xc31   : > { %v2235_v40 = vadd.f32 %v2232_v26, %v2173_v5  ;;  %v2219_v11 = vpop.f32.mrb[39].mxu1  ;;  %v2253_v14 = vpack.c.bf16 %v2247_v31, %v2246_v27 }
 0xc32   : > { %v2233_v18 = vadd.f32 %v2230_v32, %v2171_v6  ;;  %v2231_v41 = vmul.f32 %v3957_v0, %v2219_v11  ;;  %3638 = vmatprep.mubr.msk.bf16.mxu0 %vm740_vm1, %v2248_v36  ;;  %v3959_v0 = vld [vmem:[%s4306_s29] sm:$0xff]  ;;  %s598_s29 = scalar_lea.vmem [#allocation2], %s3716_s21  ;;  %s3965_s21 = sshll.u32 %s4026_s27, 4  ;;  %s3966_s21 = int_to_ptr.vmem [resolvable:$false] %s3965_s21 }
 0xc33   : > { %v2255_v48 = vpack.c.bf16 %v2235_v40, %v2235_v40  ;;  %s3115_s24 = sshll.u32 %s598_s29, 4  ;;  %s3967_s3 = scalar_lea.vmem %s3966_s21, 768  ;;  %s4751_s24 = int_to_ptr.vmem [resolvable:$true] %s3115_s24 }
 0xc34   : > { %v2234_v44 = vadd.f32 %v2231_v41, %v2172_v42  ;;  %s3961_s0 = scalar_lea.vmem %s4751_s24, 384  ;;  %p3968_p0 = scmp.lt.s32.totalorder %s4751_s24, %s3966_s21 }
 0xc35   : > { %v2278_v51 = vsel %vm740_vm1, %v2255_v48, 0  ;;  %p3962_p11 = scmp.ne.s32.totalorder %s4751_s24, %s3961_s0  ;;  %p3969_p1 = scmp.lt.s32.totalorder %s3967_s3, %s3961_s0 }
 0xc36   : > { %v2254_v45 = vpack.c.bf16 %v2234_v44, %v2233_v18 }
 0xc37   : > { %p3963_p12 = pnand %p3962_p11, %p4162_p5  ;;  %p3970_p2 = por %p3969_p1, %p3968_p0 }
 0xc38   : > { %3713 = vmatprep.subr.msk.bf16.mxu0 %vm740_vm1, %v2254_v45  ;;  %v2275_v49 = vsel %vm740_vm1, %v2254_v45, 0 }
 0xc39   : > { %3635 = vmatpush3.bf16.xpose.msra.mxu0 %v2275_v49  ;;  %p3964_p13 = pneg %p3963_p12 }
 0xc3a   : > { %3714 = vmatprep.subr.msk.bf16.mxu0 %vm740_vm1, %v2255_v48 }
 0xc3b   : > { %p3971_p3 = pnand %p3970_p2, %p3964_p13 }
 0xc41   : > { %3637 = vmatpush3.bf16.xpose.msra.mxu0 %v2278_v51 }
 0xc48   : > { %3639 = vmatmul.mubr.msk.bf16.vlgmr.msra.gmra.mrb[44].mxu0 %vm740_vm1, %v2249_v21 }
 0xc49   : > { %3642 = vmatprep.mubr.msk.bf16.mxu0 %vm740_vm1, %v2250_v38 }
 0xc50   : > { %3643 = vmatmul.mubr.msk.bf16.gmra.mrb[48].mxu0 %vm740_vm1, %v2251_v39 }
 0xc51   : > { %3646 = vmatprep.mubr.msk.bf16.mxu0 %vm740_vm1, %v2252_v22 }
 0xc58   : > { %3647 = vmatmul.mubr.msk.bf16.gmra.mrb[52].mxu0 %vm740_vm1, %v2253_v14 }
 0xd1b   : > { %v3640_v43 = vpop.f32.mrb[44].mxu0 }
 0xd1c   : > { %v2314_v52 = vpop.f32.mrb[45].mxu0  ;;  %v2323_v54 = vadd.f32 %v3640_v43, %v4315_v12 }
 0xd1d   : > { %v2315_v53 = vadd.f32 %v2314_v52, %v4309_v3  ;;  %v3641_v29 = vpop.f32.mrb[46].mxu0 }
 0xd1e   : > { %v2317_v33 = vpop.f32.mrb[47].mxu0  ;;  %v2326_v56 = vadd.f32 %v3641_v29, %v4309_v3  ;;  %v2367_v59 = vsel %vm1239_vm13, %v2323_v54, -inf }
 0xd1f   : > { %v2318_v37 = vadd.f32 %v2317_v33, %v4312_v10  ;;  %v2361_v55 = vsel %vm1239_vm13, %v2315_v53, -inf }
 0xd20   : > { %2362 = vmax.xlane.f32.xlu1 %v2361_v55  ;;  %v2370_v10 = vsel %vm1239_vm13, %v2326_v56, -inf }
 0xd21   : > { %v2364_v57 = vsel %vm1239_vm13, %v2318_v37, -inf }
 0xd22   : > { %2365 = vmax.xlane.f32.xlu0 %v2364_v57 }
 0xd23   : > { %v3644_v58 = vpop.f32.mrb[48].mxu0 }
 0xd24   : > { %v2330_v60 = vpop.f32.mrb[49].mxu0  ;;  %2368 = vmax.xlane.f32.xlu1 %v2367_v59  ;;  %v2339_v1 = vadd.f32 %v3959_v0, %v3644_v58 }
 0xd25   : > { %v2331_v62 = vadd.f32 %v3958_v61, %v2330_v60  ;;  %v3645_v12 = vpop.f32.mrb[50].mxu0 }
 0xd26   : > { %v2333_v63 = vpop.f32.mrb[51].mxu0  ;;  %2371 = vmax.xlane.f32.xlu0 %v2370_v10  ;;  %v2342_v5 = vadd.f32 %v3958_v61, %v3645_v12  ;;  %v2379_v8 = vsel %vm1239_vm13, %v2339_v1, -inf }
 0xd27   : > { %v2334_v4 = vadd.f32 %v3960_v2, %v2333_v63  ;;  %v2373_v3 = vsel %vm1239_vm13, %v2331_v62, -inf }
 0xd28   : > { %2374 = vmax.xlane.f32.xlu1 %v2373_v3  ;;  %v2382_v17 = vsel %vm1239_vm13, %v2342_v5, -inf }
 0xd29   : > { %v2376_v6 = vsel %vm1239_vm13, %v2334_v4, -inf }
 0xd2a   : > { %2377 = vmax.xlane.f32.xlu0 %v2376_v6 }
 0xd2b   : > { %v3648_v7 = vpop.f32.mrb[52].mxu0 }
 0xd2c   : > { %v2346_v9 = vpop.f32.mrb[53].mxu0  ;;  %2380 = vmax.xlane.f32.xlu1 %v2379_v8  ;;  %v4592_v20 = vadd.f32 %v3958_v61, %v3648_v7 }
 0xd2d   : > { %v2347_v13 = vadd.f32 %v3960_v2, %v2346_v9  ;;  %v3649_v15 = vpop.f32.mrb[54].mxu0 }
 0xd2e   : > { %v2349_v19 = vpop.f32.mrb[55].mxu0  ;;  %2383 = vmax.xlane.f32.xlu0 %v2382_v17  ;;  %v4595_v24 = vadd.f32 %v3960_v2, %v3649_v15  ;;  %v2391_v16 = vsel %vm1239_vm13, %v4592_v20, -inf }
 0xd2f   : > { %v2350_v21 = vadd.f32 %v3959_v0, %v2349_v19  ;;  %v2385_v23 = vsel %vm1239_vm13, %v2347_v13, -inf }
 0xd30   : > { %2386 = vmax.xlane.f32.xlu1 %v2385_v23  ;;  %v2394_v22 = vsel %vm1239_vm13, %v4595_v24, -inf }
 0xd31   : > { %v2388_v26 = vsel %vm1239_vm13, %v2350_v21, -inf }
 0xd32   : > { %2389 = vmax.xlane.f32.xlu0 %v2388_v26 }
 0xd34   : > { %2392 = vmax.xlane.f32.xlu1 %v2391_v16 }
 0xd36   : > { %2395 = vmax.xlane.f32.xlu0 %v2394_v22 }
 0xdad   : > { %v2363_v27 = vpop.xlane.xlu1 %2362 }
 0xdae   : > { %v2397_v31 = vsub.f32 %v2315_v53, %v2363_v27 }
 0xdaf   : > { %v2366_v32 = vpop.xlane.xlu0 %2365 }
 0xdb0   : > { %v2409_v34 = vmul.f32 1.442695, %v2397_v31  ;;  %v2398_v36 = vsub.f32 %v2318_v37, %v2366_v32 }
 0xdb1   : > { %v2369_v38 = vpop.xlane.xlu1 %2368 }
 0xdb2   : > { %3878 = vpow2.f32 %v2409_v34  ;;  %v2411_v39 = vmul.f32 1.442695, %v2398_v36  ;;  %v2399_v40 = vsub.f32 %v2323_v54, %v2369_v38 }
 0xdb3   : > { %v2372_v11 = vpop.xlane.xlu0 %2371 }
 0xdb4   : > { %3880 = vpow2.f32 %v2411_v39  ;;  %v2413_v14 = vmul.f32 1.442695, %v2399_v40  ;;  %v2400_v42 = vsub.f32 %v2326_v56, %v2372_v11 }
 0xdb5   : > { %v2375_v18 = vpop.xlane.xlu1 %2374 }
 0xdb6   : > { %3882 = vpow2.f32 %v2413_v14  ;;  %v2415_v41 = vmul.f32 1.442695, %v2400_v42  ;;  %v2401_v44 = vsub.f32 %v2331_v62, %v2375_v18 }
 0xdb7   : > { %v2378_v45 = vpop.xlane.xlu0 %2377 }
 0xdb8   : > { %3884 = vpow2.f32 %v2415_v41  ;;  %v2417_v48 = vmul.f32 1.442695, %v2401_v44  ;;  %v2402_v49 = vsub.f32 %v2334_v4, %v2378_v45 }
 0xdb9   : > { %v2381_v51 = vpop.xlane.xlu1 %2380 }
 0xdba   : > { %3886 = vpow2.f32 %v2417_v48  ;;  %v2419_v43 = vmul.f32 1.442695, %v2402_v49  ;;  %v2403_v52 = vsub.f32 %v2339_v1, %v2381_v51 }
 0xdbb   : > { %v2384_v53 = vpop.xlane.xlu0 %2383 }
 0xdbc   : > { %v4602_v29 = vpop.eup %3878  ;;  %3888 = vpow2.f32 %v2419_v43  ;;  %v2421_v33 = vmul.f32 1.442695, %v2403_v52  ;;  %v2404_v54 = vsub.f32 %v2342_v5, %v2384_v53 }
 0xdbd   : > { %v2387_v37 = vpop.xlane.xlu1 %2386  ;;  %v2433_v55 = vsel %vm1239_vm13, %v4602_v29, 0.0 }
 0xdbe   : > { %v4606_v56 = vpop.eup %3880  ;;  %3890 = vpow2.f32 %v2421_v33  ;;  %v2423_v57 = vmul.f32 1.442695, %v2404_v54  ;;  %v2405_v58 = vsub.f32 %v2347_v13, %v2387_v37  ;;  %2434 = vadd.xlane.f32.xlu1 %v2433_v55 }
 0xdbf   : > { %v2390_v59 = vpop.xlane.xlu0 %2389  ;;  %v2436_v60 = vsel %vm1239_vm13, %v4606_v56, 0.0 }
 0xdc0   : > { %v4610_v61 = vpop.eup %3882  ;;  %3892 = vpow2.f32 %v2423_v57  ;;  %v2425_v62 = vmul.f32 1.442695, %v2405_v58  ;;  %v2406_v12 = vsub.f32 %v2350_v21, %v2390_v59  ;;  %2437 = vadd.xlane.f32.xlu0 %v2436_v60 }
 0xdc1   : > { %v2393_v10 = vpop.xlane.xlu1 %2392  ;;  %v2439_v63 = vsel %vm1239_vm13, %v4610_v61, 0.0 }
 0xdc2   : > { %v4614_v0 = vpop.eup %3884  ;;  %3894 = vpow2.f32 %v2425_v62  ;;  %v2427_v1 = vmul.f32 1.442695, %v2406_v12  ;;  %v2407_v2 = vsub.f32 %v4592_v20, %v2393_v10  ;;  %2440 = vadd.xlane.f32.xlu1 %v2439_v63 }
 0xdc3   : > { %v2396_v4 = vpop.xlane.xlu0 %2395  ;;  %v2442_v3 = vsel %vm1239_vm13, %v4614_v0, 0.0 }
 0xdc4   : > { %v4619_v5 = vpop.eup %3886  ;;  %3896 = vpow2.f32 %v2427_v1  ;;  %v2429_v6 = vmul.f32 1.442695, %v2407_v2  ;;  %v2408_v7 = vsub.f32 %v4595_v24, %v2396_v4  ;;  %2443 = vadd.xlane.f32.xlu0 %v2442_v3 }
 0xdc5   : > { %v2445_v8 = vsel %vm1239_vm13, %v4619_v5, 0.0 }
 0xdc6   : > { %v4624_v9 = vpop.eup %3888  ;;  %3898 = vpow2.f32 %v2429_v6  ;;  %v2431_v13 = vmul.f32 1.442695, %v2408_v7  ;;  %2446 = vadd.xlane.f32.xlu1 %v2445_v8 }
 0xdc7   : > { %v2448_v15 = vsel %vm1239_vm13, %v4624_v9, 0.0 }
 0xdc8   : > { %v4628_v17 = vpop.eup %3890  ;;  %3900 = vpow2.f32 %v2431_v13  ;;  %2449 = vadd.xlane.f32.xlu0 %v2448_v15  ;;  %v3789_v13 = vld [vmem:[%s4810_s11 + $0x18] sm:$0xff]  }
 0xdc9   : > { %v2451_v19 = vsel %vm1239_vm13, %v4628_v17, 0.0 }
 0xdca   : > { %v3893_v20 = vpop.eup %3892  ;;  %2452 = vadd.xlane.f32.xlu1 %v2451_v19 }
 0xdcb   : > { %v2454_v21 = vsel %vm1239_vm13, %v3893_v20, 0.0 }
 0xdcc   : > { %v4633_v23 = vpop.eup %3894  ;;  %2455 = vadd.xlane.f32.xlu0 %v2454_v21 }
 0xdcd   : > { %v2457_v24 = vsel %vm1239_vm13, %v4633_v23, 0.0 }
 0xdce   : > { %v3897_v26 = vpop.eup %3896  ;;  %2458 = vadd.xlane.f32.xlu1 %v2457_v24 }
 0xdcf   : > { %v2460_v16 = vsel %vm1239_vm13, %v3897_v26, 0.0 }
 0xdd0   : > { %v4638_v22 = vpop.eup %3898  ;;  %2461 = vadd.xlane.f32.xlu0 %v2460_v16 }
 0xdd1   : > { %v2463_v27 = vsel %vm1239_vm13, %v4638_v22, 0.0 }
 0xdd2   : > { %v3901_v31 = vpop.eup %3900  ;;  %2464 = vadd.xlane.f32.xlu1 %v2463_v27 }
 0xdd3   : > { %v2466_v32 = vsel %vm1239_vm13, %v3901_v31, 0.0 }
 0xdd4   : > { %2467 = vadd.xlane.f32.xlu0 %v2466_v32 }
 0xe4b   : > { %v2435_v34 = vpop.xlane.xlu1 %2434 }
 0xe4c   : > { %3902 = vrcp.f32 %v2435_v34 }
 0xe4d   : > { %v2438_v36 = vpop.xlane.xlu0 %2437 }
 0xe4e   : > { %3904 = vrcp.f32 %v2438_v36 }
 0xe4f   : > { %v2441_v38 = vpop.xlane.xlu1 %2440 }
 0xe50   : > { %3906 = vrcp.f32 %v2441_v38 }
 0xe51   : > { %v2444_v39 = vpop.xlane.xlu0 %2443 }
 0xe52   : > { %3908 = vrcp.f32 %v2444_v39 }
 0xe53   : > { %v2447_v40 = vpop.xlane.xlu1 %2446 }
 0xe54   : > { %3910 = vrcp.f32 %v2447_v40 }
 0xe55   : > { %v2450_v11 = vpop.xlane.xlu0 %2449 }
 0xe56   : > { %v3903_v14 = vpop.eup %3902  ;;  %3912 = vrcp.f32 %v2450_v11 }
 0xe57   : > { %v2453_v42 = vpop.xlane.xlu1 %2452  ;;  %v2481_v44 = vmul.f32 %v3903_v14, %v4602_v29 }
 0xe58   : > { %v3905_v18 = vpop.eup %3904  ;;  %3914 = vrcp.f32 %v2453_v42 }
 0xe59   : > { %v2456_v41 = vpop.xlane.xlu0 %2455  ;;  %v2482_v45 = vmul.f32 %v3905_v18, %v4606_v56 }
 0xe5a   : > { %v3907_v48 = vpop.eup %3906  ;;  %3916 = vrcp.f32 %v2456_v41 }
 0xe5b   : > { %v2459_v49 = vpop.xlane.xlu1 %2458  ;;  %v2493_v51 = vpack.c.bf16 %v2482_v45, %v2481_v44  ;;  %v2483_v52 = vmul.f32 %v3907_v48, %v4610_v61 }
 0xe5c   : > { %v3909_v43 = vpop.eup %3908  ;;  %3918 = vrcp.f32 %v2459_v49 }
 0xe5d   : > { %v2484_v53 = vmul.f32 %v3909_v43, %v4614_v0  ;;  %v2462_v33 = vpop.xlane.xlu0 %2461  ;;  %3654 = vmatprep.mubr.msk.bf16.mxu1 %vm1239_vm13, %v2493_v51 }
 0xe5e   : > { %v3911_v54 = vpop.eup %3910  ;;  %3920 = vrcp.f32 %v2462_v33 }
 0xe5f   : > { %v2465_v37 = vpop.xlane.xlu1 %2464  ;;  %v2494_v55 = vpack.c.bf16 %v2484_v53, %v2483_v52  ;;  %v2485_v57 = vmul.f32 %v3911_v54, %v4619_v5 }
 0xe60   : > { %v3913_v29 = vpop.eup %3912  ;;  %3922 = vrcp.f32 %v2465_v37 }
 0xe61   : > { %v2468_v56 = vpop.xlane.xlu0 %2467  ;;  %3655 = vmatmul.mubr.msk.bf16.vlgmr.msra.gmra.mrb[40].mxu1 %vm1239_vm13, %v2494_v55  ;;  %v2486_v58 = vmul.f32 %v3913_v29, %v4624_v9  ;;  %v3788_v9 = vld [vmem:[%s4810_s11 + $0x10] sm:$0xff]  }
 0xe62   : > { %v3915_v59 = vpop.eup %3914  ;;  %3924 = vrcp.f32 %v2468_v56  ;;  %3666 = vmatprep.subr.bf16.mxu1 %v3788_v9 }
 0xe63   : > { %v2495_v60 = vpack.c.bf16 %v2486_v58, %v2485_v57  ;;  %v2487_v62 = vmul.f32 %v3915_v59, %v4628_v17  ;;  %3667 = vmatpush3.bf16.msra.mxu1 %v3788_v9 }
 0xe64   : > { %v3917_v61 = vpop.eup %3916  ;;  %3668 = vmatprep.subr.bf16.mxu1 %v3789_v13 }
 0xe65   : > { %3658 = vmatprep.mubr.msk.bf16.mxu1 %vm1239_vm13, %v2495_v60  ;;  %v2488_v12 = vmul.f32 %v3917_v61, %v3893_v20 }
 0xe66   : > { %v3919_v10 = vpop.eup %3918 }
 0xe67   : > { %v2496_v63 = vpack.c.bf16 %v2488_v12, %v2487_v62  ;;  %v2489_v1 = vmul.f32 %v3919_v10, %v4633_v23  ;;  %3669 = vmatpush3.bf16.msra.mxu1 %v3789_v13  ;;  %v3792_v62 = vld [vmem:[%s4813_s14 + $0x10] sm:$0xff]   ;;  %v3791_v12 = vld [vmem:[%s4812_s13 + $0x18] sm:$0xff]  }
 0xe68   : > { %v3921_v0 = vpop.eup %3920  ;;  %3682 = vmatprep.subr.bf16.mxu1 %v3792_v62  ;;  %v3793_v10 = vld [vmem:[%s4813_s14 + $0x18] sm:$0xff]  }
 0xe69   : > { %3659 = vmatmul.mubr.msk.bf16.gmra.mrb[44].mxu1 %vm1239_vm13, %v2496_v63  ;;  %v2490_v2 = vmul.f32 %v3921_v0, %v3897_v26 }
 0xe6a   : > { %v3923_v4 = vpop.eup %3922 }
 0xe6b   : > { %v2497_v3 = vpack.c.bf16 %v2490_v2, %v2489_v1  ;;  %v2491_v6 = vmul.f32 %v3923_v4, %v4638_v22 }
 0xe6c   : > { %v3925_v5 = vpop.eup %3924 }
 0xe6d   : > { %3662 = vmatprep.mubr.msk.bf16.mxu1 %vm1239_vm13, %v2497_v3  ;;  %v2492_v7 = vmul.f32 %v3925_v5, %v3901_v31 }
 0xe6f   : > { %v2498_v8 = vpack.c.bf16 %v2492_v7, %v2491_v6 }
 0xe71   : > { %3663 = vmatmul.mubr.msk.bf16.gmra.mrb[48].mxu1 %vm1239_vm13, %v2498_v8 }
 0xf34   : > { %v3656_v15 = vpop.f32.mrb[40].mxu1 }
 0xf35   : > { %v2556_v17 = vpop.f32.mrb[41].mxu1  ;;  %v2605_v39 = vmul.f32 %v3656_v15, %v4271_v25  ;;  %v3317_v15 = vld [vmem:[%s4811_s12 + $0x1] ss:$0 sm:$0xff] }
 0xf36   : > { %v2603_v19 = vmul.f32 %v2556_v17, %v4271_v25  ;;  %v3657_v20 = vpop.f32.mrb[42].mxu1 }
 0xf37   : > { %v2609_v21 = vmul.f32 %v3657_v20, %v4275_v30  ;;  %v2559_v23 = vpop.f32.mrb[43].mxu1 }
 0xf38   : > { %v2604_v27 = vmul.f32 %v2559_v23, %v4271_v25 }
 0xf39   : > { %v2612_v24 = vadd.f32 %v2609_v21, %v2603_v19 }
 0xf3c   : > { %v3660_v26 = vpop.f32.mrb[44].mxu1 }
 0xf3d   : > { %v2615_v16 = vmul.f32 %v3660_v26, %v4273_v28  ;;  %v2572_v22 = vpop.f32.mrb[45].mxu1 }
 0xf3e   : > { %v2610_v31 = vmul.f32 %v2572_v22, %v4275_v30  ;;  %v3661_v32 = vpop.f32.mrb[46].mxu1  ;;  %v3794_v22 = vld [vmem:[%s4814_s15 + $0x20] sm:$0xff]  }
 0xf3f   : > { %v2618_v34 = vadd.f32 %v2615_v16, %v2612_v24  ;;  %v2616_v36 = vmul.f32 %v3661_v32, %v4273_v28  ;;  %v2575_v38 = vpop.f32.mrb[47].mxu1  ;;  %v3797_v32 = vld [vmem:[%s4814_s15 + $0x38] sm:$0xff]  }
 0xf40   : > { %v2613_v40 = vadd.f32 %v2610_v31, %v2604_v27  ;;  %v2611_v11 = vmul.f32 %v2575_v38, %v4275_v30  ;;  %v3795_v27 = vld [vmem:[%s4814_s15 + $0x28] sm:$0xff]   ;;  %v3796_v31 = vld [vmem:[%s4814_s15 + $0x30] sm:$0xff]  }
 0xf42   : > { %v2619_v14 = vadd.f32 %v2616_v36, %v2613_v40  ;;  %v2614_v42 = vadd.f32 %v2611_v11, %v2605_v39 }
 0xf44   : > { %v3664_v18 = vpop.f32.mrb[48].mxu1 }
 0xf45   : > { %v2622_v41 = vmul.f32 %v3664_v18, %v4277_v35  ;;  %v2588_v44 = vpop.f32.mrb[49].mxu1 }
 0xf46   : > { %v2617_v45 = vmul.f32 %v2588_v44, %v4273_v28  ;;  %v3665_v48 = vpop.f32.mrb[50].mxu1 }
 0xf47   : > { %v2625_v49 = vadd.f32 %v2622_v41, %v2619_v14  ;;  %v2623_v51 = vmul.f32 %v3665_v48, %v4277_v35  ;;  %v2591_v43 = vpop.f32.mrb[51].mxu1 }
 0xf48   : > { %v2620_v52 = vadd.f32 %v2617_v45, %v2614_v42  ;;  %v2621_v53 = vmul.f32 %v2591_v43, %v4277_v35 }
 0xf4a   : > { %v2626_v25 = vadd.f32 %v2623_v51, %v2620_v52  ;;  %v2624_v33 = vadd.f32 %v2621_v53, %v2618_v34 }
 0xf4c   : > { %v2633_v54 = vpack.c.bf16 %v2626_v25, %v2626_v25  ;;  %v2632_v30 = vpack.c.bf16 %v2625_v49, %v2624_v33 }
 0xf4e   : > { %3670 = vmatprep.mubr.msk.bf16.mxu1 %vm740_vm1, %v2632_v30 }
 0xf4f   : > { %3671 = vmatmul.mubr.msk.bf16.vlgmr.msra.gmra.mrb[52].mxu1 %vm740_vm1, %v2633_v54 }
 0xf50   : > { %3683 = vmatpush3.bf16.msra.mxu1 %v3792_v62 }
 0xf51   : > { %3684 = vmatprep.subr.bf16.mxu1 %v3793_v10 }
 0xf54   : > { %3685 = vmatpush3.bf16.msra.mxu1 %v3793_v10 }
0x1022   : > { %v3672_v37 = vpop.f32.mrb[52].mxu1 }
0x1023   : > { %v2686_v55 = vpop.f32.mrb[53].mxu1  ;;  %v4679_v28 = vadd.f32 %v3672_v37, %v4478_v46 }
0x1024   : > { %v4682_v29 = vadd.f32 %v2686_v55, %v4481_v47  ;;  %v3673_v56 = vpop.f32.mrb[54].mxu1 }
0x1025   : > { %v2689_v57 = vpop.f32.mrb[55].mxu1  ;;  %v2707_v46 = vmul.f32 %v4679_v28, %v4679_v28 }
0x1026   : > { %v4685_v35 = vadd.f32 %v2689_v57, %v4484_v50  ;;  %v2705_v58 = vmul.f32 %v4682_v29, %v4682_v29  ;;  %v3790_v50 = vld [vmem:[%s4812_s13 + $0x10] sm:$0xff]  }
0x1027   : > { %v2714_v61 = vsel %vm740_vm1, %v2707_v46, 0.0  ;;  %3674 = vmatprep.subr.bf16.mxu0 %v3790_v50 }
0x1028   : > { %v2708_v59 = vsel %vm740_vm1, %v2705_v58, 0.0  ;;  %v2706_v60 = vmul.f32 %v4685_v35, %v4685_v35  ;;  %3675 = vmatpush3.bf16.msra.mxu0 %v3790_v50 }
0x1029   : > { %2709 = vadd.xlane.f32.xlu1 %v2708_v59  ;;  %3676 = vmatprep.subr.bf16.mxu0 %v3791_v12 }
0x102a   : > { %v2711_v47 = vsel %vm740_vm1, %v2706_v60, 0.0 }
0x102b   : > { %2712 = vadd.xlane.f32.xlu0 %v2711_v47 }
0x102c   : > { %3677 = vmatpush3.bf16.msra.mxu0 %v3791_v12 }
0x102d   : > { %2715 = vadd.xlane.f32.xlu1 %v2714_v61  ;;  %3690 = vmatprep.subr.bf16.mxu0 %v3794_v22 }
0x10b6   : > { %v2710_v63 = vpop.xlane.xlu1 %2709 }
0x10b7   : > { %v2717_v0 = vmul.f32 0.03125, %v2710_v63 }
0x10b8   : > { %v2713_v1 = vpop.xlane.xlu0 %2712 }
0x10b9   : > { %v2720_v2 = vadd.f32 1e-06, %v2717_v0  ;;  %v2718_v4 = vmul.f32 0.03125, %v2713_v1 }
0x10ba   : > { %v2716_v3 = vpop.xlane.xlu1 %2715 }
0x10bb   : > { %3926 = vrsqrt.f32 %v2720_v2  ;;  %v2721_v5 = vadd.f32 1e-06, %v2718_v4  ;;  %v2719_v6 = vmul.f32 0.03125, %v2716_v3 }
0x10bd   : > { %3928 = vrsqrt.f32 %v2721_v5  ;;  %v2722_v7 = vadd.f32 1e-06, %v2719_v6 }
0x10bf   : > { %3930 = vrsqrt.f32 %v2722_v7 }
0x10c5   : > { %v3927_v8 = vpop.eup %3926 }
0x10c6   : > { %v2726_v9 = vmul.f32 %v3927_v8, %v4682_v29 }
0x10c7   : > { %v3929_v13 = vpop.eup %3928 }
0x10c8   : > { %v2727_v17 = vmul.f32 %v3929_v13, %v4685_v35  ;;  %v2735_v21 = vmul.f32 %v3317_v15, %v2726_v9 }
0x10c9   : > { %v3931_v19 = vpop.eup %3930 }
0x10ca   : > { %v2728_v20 = vmul.f32 %v3931_v19, %v4679_v28  ;;  %v2736_v23 = vmul.f32 %v3317_v15, %v2727_v17 }
0x10cc   : > { %v2737_v24 = vmul.f32 %v3317_v15, %v2728_v20  ;;  %v2743_v26 = vpack.c.bf16 %v2736_v23, %v2735_v21  ;;  %v3351_v21 = vld [vmem:[%s4815_s16] ss:$0 sm:$0xff] }
0x10ce   : > { %v2744_v16 = vpack.c.bf16 %v2737_v24, %v2737_v24  ;;  %3678 = vmatprep.mubr.msk.bf16.mxu0 %vm740_vm1, %v2743_v26  ;;  %3686 = vmatprep.mubr.msk.bf16.mxu1 %vm740_vm1, %v2743_v26 }
0x10d0   : > { %3679 = vmatmul.mubr.msk.bf16.vlgmr.msra.gmra.mrb[56].mxu0 %vm740_vm1, %v2744_v16  ;;  %3687 = vmatmul.mubr.msk.bf16.vlgmr.msra.gmra.mrb[56].mxu1 %vm740_vm1, %v2744_v16 }
0x10d1   : > { %3691 = vmatpush3.bf16.msra.mxu0 %v3794_v22 }
0x10d2   : > { %3692 = vmatprep.subr.bf16.mxu0 %v3795_v27 }
0x10d5   : > { %3693 = vmatpush3.bf16.msra.mxu0 %v3795_v27 }
0x10d6   : > { %3694 = vmatprep.subr.bf16.mxu0 %v3796_v31 }
0x10d9   : > { %3695 = vmatpush3.bf16.msra.mxu0 %v3796_v31 }
0x10da   : > { %3696 = vmatprep.subr.bf16.mxu0 %v3797_v32 }
0x10dd   : > { %3697 = vmatpush3.bf16.msra.mxu0 %v3797_v32 }
0x11a3   : > { %v3680_v34 = vpop.f32.mrb[56].mxu0  ;;  %v3688_v36 = vpop.f32.mrb[56].mxu1 }
0x11a4   : > { %v3336_v38 = vmul.f32 -1.442695, %v3680_v34  ;;  %v2797_v39 = vpop.f32.mrb[57].mxu0  ;;  %v2862_v40 = vpop.f32.mrb[57].mxu1 }
0x11a5   : > { %v3334_v11 = vmul.f32 -1.442695, %v2797_v39  ;;  %v3681_v14 = vpop.f32.mrb[58].mxu0  ;;  %v3689_v42 = vpop.f32.mrb[58].mxu1 }
0x11a6   : > { %3932 = vpow2.f32 %v3336_v38  ;;  %v2800_v18 = vpop.f32.mrb[59].mxu0  ;;  %v2865_v41 = vpop.f32.mrb[59].mxu1 }
0x11a7   : > { %3934 = vpow2.f32 %v3334_v11  ;;  %v3335_v44 = vmul.f32 -1.442695, %v2800_v18 }
0x11a9   : > { %3936 = vpow2.f32 %v3335_v44 }
0x11b0   : > { %v3933_v45 = vpop.eup %3932 }
0x11b1   : > { %v3935_v48 = vpop.eup %3934  ;;  %v2887_v49 = vadd.f32 1.0, %v3933_v45 }
0x11b2   : > { %v2885_v51 = vadd.f32 1.0, %v3935_v48 }
0x11b3   : > { %v3937_v43 = vpop.eup %3936  ;;  %3938 = vrcp.f32 %v2887_v49 }
0x11b4   : > { %3940 = vrcp.f32 %v2885_v51  ;;  %v2886_v52 = vadd.f32 1.0, %v3937_v43 }
0x11b6   : > { %3942 = vrcp.f32 %v2886_v52 }
0x11bd   : > { %v3939_v53 = vpop.eup %3938 }
0x11be   : > { %v3941_v25 = vpop.eup %3940  ;;  %v2896_v33 = vmul.f32 %v3939_v53, %v3680_v34 }
0x11bf   : > { %v2894_v54 = vmul.f32 %v3941_v25, %v2797_v39 }
0x11c0   : > { %v3943_v30 = vpop.eup %3942  ;;  %v2899_v37 = vmul.f32 %v3688_v36, %v2896_v33 }
0x11c1   : > { %v2897_v55 = vmul.f32 %v2894_v54, %v2862_v40  ;;  %v2895_v56 = vmul.f32 %v3943_v30, %v2800_v18 }
0x11c2   : > { %v2910_v59 = vpack.c.bf16 %v2899_v37, %v2899_v37 }
0x11c3   : > { %v2898_v57 = vmul.f32 %v2895_v56, %v2865_v41 }
0x11c5   : > { %v2909_v58 = vpack.c.bf16 %v2898_v57, %v2897_v55 }
0x11c7   : > { %3698 = vmatprep.mubr.msk.bf16.mxu0 %vm1810_vm14, %v2909_v58 }
0x11c8   : > { %3699 = vmatmul.mubr.msk.bf16.vlgmr.msra.gmra.mrb[60].mxu0 %vm1810_vm14, %v2910_v59 }
0x129b   : > { %v3700_v60 = vpop.f32.mrb[60].mxu0 }
0x129c   : > { %v2975_v46 = vpop.f32.mrb[61].mxu0  ;;  %v2991_v47 = vadd.f32 %v3700_v60, %v4679_v28  ;;  %v3798_v28 = vld [vmem:[%s4816_s17] sm:$0xff]  }
0x129d   : > { %v2989_v61 = vadd.f32 %v2975_v46, %v4682_v29  ;;  %v3701_v50 = vpop.f32.mrb[62].mxu0  ;;  %3702 = vmatprep.subr.bf16.mxu1 %v3798_v28  ;;  %v3799_v29 = vld [vmem:[%s4816_s17 + $0x8] sm:$0xff]  }
0x129e   : > { %v2978_v62 = vpop.f32.mrb[63].mxu0  ;;  %v2995_v1 = vmul.f32 %v2991_v47, %v2991_v47  ;;  %3703 = vmatpush3.bf16.msra.mxu1 %v3798_v28 }
0x129f   : > { %v2990_v12 = vadd.f32 %v2978_v62, %v4685_v35  ;;  %v2993_v10 = vmul.f32 %v2989_v61, %v2989_v61  ;;  %3704 = vmatprep.subr.bf16.mxu1 %v3799_v29 }
0x12a0   : > { %v3002_v4 = vsel %vm740_vm1, %v2995_v1, 0.0 }
0x12a1   : > { %v2996_v63 = vsel %vm740_vm1, %v2993_v10, 0.0  ;;  %v2994_v0 = vmul.f32 %v2990_v12, %v2990_v12 }
0x12a2   : > { %2997 = vadd.xlane.f32.xlu0 %v2996_v63  ;;  %3705 = vmatpush3.bf16.msra.mxu1 %v3799_v29 }
0x12a3   : > { %v2999_v2 = vsel %vm740_vm1, %v2994_v0, 0.0 }
0x12a4   : > { %3000 = vadd.xlane.f32.xlu1 %v2999_v2 }
0x12a6   : > { %3003 = vadd.xlane.f32.xlu0 %v3002_v4 }
0x132f   : > { %v2998_v35 = vpop.xlane.xlu0 %2997 }
0x1330   : > { %v3005_v3 = vmul.f32 0.03125, %v2998_v35 }
0x1331   : > { %v3001_v5 = vpop.xlane.xlu1 %3000 }
0x1332   : > { %v3008_v6 = vadd.f32 1e-06, %v3005_v3  ;;  %v3006_v7 = vmul.f32 0.03125, %v3001_v5 }
0x1333   : > { %v3004_v8 = vpop.xlane.xlu0 %3003 }
0x1334   : > { %3944 = vrsqrt.f32 %v3008_v6  ;;  %v3009_v9 = vadd.f32 1e-06, %v3006_v7  ;;  %v3007_v13 = vmul.f32 0.03125, %v3004_v8 }
0x1336   : > { %3946 = vrsqrt.f32 %v3009_v9  ;;  %v3010_v15 = vadd.f32 1e-06, %v3007_v13 }
0x1338   : > { %3948 = vrsqrt.f32 %v3010_v15 }
0x133e   : > { %v3945_v17 = vpop.eup %3944 }
0x133f   : > { %v3014_v19 = vmul.f32 %v3945_v17, %v2989_v61 }
0x1340   : > { %v3947_v20 = vpop.eup %3946 }
0x1341   : > { %v3015_v23 = vmul.f32 %v3947_v20, %v2990_v12  ;;  %v3023_v16 = vmul.f32 %v3351_v21, %v3014_v19 }
0x1342   : > { %v3949_v24 = vpop.eup %3948 }
0x1343   : > { %v3016_v26 = vmul.f32 %v3949_v24, %v2991_v47  ;;  %v3024_v22 = vmul.f32 %v3351_v21, %v3015_v23 }
0x1345   : > { %v3030_v27 = vpack.c.bf16 %v3024_v22, %v3023_v16  ;;  %v3025_v31 = vmul.f32 %v3351_v21, %v3016_v26 }
0x1347   : > { %3706 = vmatprep.mubr.msk.bf16.mxu1 %vm740_vm1, %v3030_v27  ;;  %v3031_v32 = vpack.c.bf16 %v3025_v31, %v3025_v31 }
0x1349   : > { %3707 = vmatmul.mubr.msk.bf16.vlgmr.msra.gmra.mrb[60].mxu1 %vm740_vm1, %v3031_v32 }
0x141c   : > { %v3708_v34 = vpop.f32.mrb[60].mxu1 }
0x141d   : > { %3100 = vst [vmem:[%s598_s29 + $0x10] sm:$0xff] %v3708_v34  ;;  %v3084_v36 = vpop.f32.mrb[61].mxu1 }
0x141e   : > { %3098 = vst [vmem:[%s598_s29] sm:$0xff] %v3084_v36  ;;  %v3709_v38 = vpop.f32.mrb[62].mxu1 }
0x141f   : > { %v3087_v39 = vpop.f32.mrb[63].mxu1 }
0x1420   : > { %3099 = vst [vmem:[%s598_s29 + $0x8] sm:$0xff] %v3087_v39 }
0x1421   : > { %3974 = shalt.err (!%p3971_p3)
}
0x1422   : > { %s3975_s23 = scalar_lea.hbm %s4756_s19, 384  ;;  %s3979_s1 = scalar_lea.hbm %s4817_s18, 768 }
0x1423   : > { %p3976_p4 = scmp.ne.s32.totalorder %s4756_s19, %s3975_s23  ;;  %p3980_p9 = scmp.lt.u32.totalorder %s4756_s19, %s4817_s18 }
0x1424   : > { %p3981_p10 = scmp.lt.u32.totalorder %s3979_s1, %s3975_s23  ;;  %p3983_p12 = scmp.lt.u32.totalorder %s3975_s23, %s4756_s19 }
0x1425   : > { %p3977_p7 = pnand %p3976_p4, %p4162_p5 }
0x1426   : > { %p3982_p11 = por %p3981_p10, %p3980_p9 }
0x1427   : > { %p3978_p8 = pneg %p3977_p7 }
0x1428   : > { %p3984_p13 = por %p3983_p12, %p3982_p11 }
0x142a   : > { %p3985_p0 = pnand %p3984_p13, %p3978_p8 }
0x142c   : > { %3988 = shalt.err (!%p3985_p0)
}
0x142d   : > { %s4027_s3 = smov 128   ;;  %s4028_s0 = smov 8  }
0x142e   : > { %3719 = dma.vmem_to_hbm [thread:$0]  (%p4162_p5), %s4751_s24, 384, %s4756_s19, %s4758_s20, %s4027_s3, %s4027_s3, %s4028_s0  }
0x142f PF: > { %s4839_s21 = sld [smem:[#allocation5_spill]]  ;;  %p3725_p1 = scmp.ge.s32.totalorder %s4023_s30, 2 }
0x1431   : > { %p3722_p2 = pnand %p3725_p1, %p4166_p6 }
0x1435   : > { %s3130_s25 = sand.u32 1, %s4839_s21  }
0x1436   : > { %s3131_s23 = scalar_lea.sflag [#allocation3], %s3130_s25 }
0x1437   : > { %4006 = dma.done.wait (!%p3722_p2), %s3131_s23, 384  }
0x1438   : > { %4008 = vsyncadd (!%p3722_p2), %s3131_s23, 4294966912  ;;  %s4841_s30 = sld [smem:[#allocation7_spill]]  ;;  %s4842_s1 = sld [smem:[#allocation6_spill]] }
0x1439   : > { %s4843_s29 = sld [smem:[#allocation8_spill]]  ;;  %s4844_s27 = smov %s4015_s28 }
0x143e   : > { %p28_p3 = scmp.ge.s32.totalorder %s4841_s30, 4   ;;  %s4845_s28 = smov %s4842_s1 }
0x1440   :  { %30 = sbr.rel (!%p28_p3) target bundleno = 8 (0x8), region = 142 }
0x1447   :  { %3136 = vsyncpa [#allocation3], 1 }
0x1448   :  { %3138 = vsyncpa [#allocation3 + $0x1], 1 }

</bundles_post_ra>
